<compile_context>
chip_gen: v7x
topology: tpu7x:2x2x1
jax: 0.10.0
libtpu: 0.0.40
codegen_flags: <defaults>
</compile_context>

<pallas_src>
import functools
import math

import jax
import jax.numpy as jnp
from jax.experimental import pallas as pl
from jax.experimental.pallas import tpu as pltpu

NEG_INF = -1e9


# --------------------------- fused decoder layer ---------------------------

def _fused_layer_kernel(h_ref, mask_ref, cos_ref, sin_ref,
                        ln1_ref, wqkv_ref, wo_ref,
                        ln2_ref, wgu_ref, wdn_ref,
                        o_ref, *, B, S, NH, HD, eps, scale):
    """One full decoder layer on a (B*S, H) residual block, all in VMEM."""
    H = NH * HD
    HD2 = HD // 2
    I = wdn_ref.shape[0]

    def rmsnorm(x, w):                       # f32 elementwise
        var = jnp.mean(x * x, axis=-1, keepdims=True)
        return x * jax.lax.rsqrt(var + eps) * w

    def mm(a_f32, w_bf16):                   # bf16 MXU operands, f32 accumulate
        return jax.lax.dot_general(
            a_f32.astype(jnp.bfloat16), w_bf16,
            (((1,), (0,)), ((), ())),
            preferred_element_type=jnp.float32)

    h = h_ref[...]                           # (B*S, H) f32 residual stream
    cos = cos_ref[...]                       # (S, HD/2) f32
    sin = sin_ref[...]
    mask = mask_ref[...]                     # (B, S) f32 (1 keep, 0 pad)

    # ---------------- attention block ----------------
    x = rmsnorm(h, ln1_ref[...])
    qkv = mm(x, wqkv_ref[...])               # (B*S, 3H) f32, fused q/k/v

    # causal mask built in-kernel (no (B,S,S) HBM bias tensor)
    row = jax.lax.broadcasted_iota(jnp.int32, (S, S), 0)
    col = jax.lax.broadcasted_iota(jnp.int32, (S, S), 1)
    causal = row >= col                      # (S, S) bool

    def rope(block):                         # block: (S, HD) f32
        a = block[:, :HD2]
        b = block[:, HD2:]
        return jnp.concatenate([a * cos - b * sin, b * cos + a * sin], axis=-1)

    batch_rows = []
    for b in range(B):
        keep = mask[b:b + 1, :] > 0.5        # (1, S) key-padding mask
        bias = jnp.where(causal & keep, 0.0, NEG_INF).astype(jnp.float32)
        r0, r1 = b * S, (b + 1) * S
        head_outs = []
        for hh in range(NH):
            q = rope(qkv[r0:r1, hh * HD:(hh + 1) * HD])
            k = rope(qkv[r0:r1, H + hh * HD:H + (hh + 1) * HD])
            v = qkv[r0:r1, 2 * H + hh * HD:2 * H + (hh + 1) * HD]
            s = jax.lax.dot_general(
                q.astype(jnp.bfloat16), k.astype(jnp.bfloat16),
                (((1,), (1,)), ((), ())),          # q @ k^T
                preferred_element_type=jnp.float32) * scale + bias
            m = jnp.max(s, axis=-1, keepdims=True)
            p = jnp.exp(s - m)                      # f32 softmax (v5e-safe)
            inv = pl.reciprocal(jnp.sum(p, axis=-1, keepdims=True), approx=True)
            o = jax.lax.dot_general(
                p.astype(jnp.bfloat16), v.astype(jnp.bfloat16),
                (((1,), (0,)), ((), ())),
                preferred_element_type=jnp.float32) * inv
            head_outs.append(o)                     # (S, HD)
        batch_rows.append(jnp.concatenate(head_outs, axis=-1))   # (S, H)
    attn = jnp.concatenate(batch_rows, axis=0)       # (B*S, H)

    h1 = h + mm(attn, wo_ref[...])                   # residual fused in-kernel

    # ---------------- MLP block ----------------
    x2 = rmsnorm(h1, ln2_ref[...])
    gu = mm(x2, wgu_ref[...])                        # (B*S, 2I) lane-dense
    gate = gu[:, :I]
    up = gu[:, I:]
    act = gate * jax.nn.sigmoid(gate) * up           # SiLU(gate) * up, f32
    h2 = h1 + mm(act, wdn_ref[...])                  # residual fused in-kernel

    o_ref[...] = h2.astype(o_ref.dtype)


def fused_layer(h_flat, mask_f32, cos, sin, lw, cfg):
    B, S = mask_f32.shape
    H, I, NH, HD = cfg["hidden"], cfg["intermediate"], cfg["heads"], cfg["head_dim"]
    M = B * S

    def full(shape):
        return pl.BlockSpec(shape, lambda i: (0,) * len(shape))

    kernel = functools.partial(
        _fused_layer_kernel,
        B=B, S=S, NH=NH, HD=HD, eps=1e-6, scale=1.0 / math.sqrt(HD))

    return pl.pallas_call(
        kernel,
        out_shape=jax.ShapeDtypeStruct((M, H), jnp.float32),
        grid=(1,),
        in_specs=[
            full((M, H)),            # residual stream
            full((B, S)),            # attention_mask
            full((S, HD // 2)),      # rope cos
            full((S, HD // 2)),      # rope sin
            full((1, H)),            # input_layernorm
            full((H, 3 * H)),        # fused q/k/v weights (bf16)
            full((H, H)),            # o_proj (bf16)
            full((1, H)),            # post_attention_layernorm
            full((H, 2 * I)),        # fused gate/up weights (bf16)
            full((I, H)),            # down_proj (bf16)
        ],
        out_specs=full((M, H)),
        compiler_params=pltpu.CompilerParams(
            dimension_semantics=("arbitrary",)),
    )(h_flat, mask_f32, cos, sin,
      lw["ln1"], lw["wqkv"], lw["wo"], lw["ln2"], lw["wgu"], lw["wdn"])


# --------------------------- final RMSNorm kernel ---------------------------

def _rmsnorm_kernel(x_ref, w_ref, o_ref, *, eps):
    x = x_ref[...]
    var = jnp.mean(x * x, axis=-1, keepdims=True)
    o_ref[...] = (x * jax.lax.rsqrt(var + eps) * w_ref[...]).astype(o_ref.dtype)


def pallas_rmsnorm(x, w, eps=1e-6):
    M, H = x.shape
    return pl.pallas_call(
        functools.partial(_rmsnorm_kernel, eps=eps),
        out_shape=jax.ShapeDtypeStruct((M, H), jnp.float32),
        grid=(1,),
        in_specs=[pl.BlockSpec((M, H), lambda i: (0, 0)),
                  pl.BlockSpec((1, H), lambda i: (0, 0))],
        out_specs=pl.BlockSpec((M, H), lambda i: (0, 0)),
    )(x, w.reshape(1, H))


# ------------------------------- parameters -------------------------------

def init_params(key, cfg):
    H, I, V = cfg["hidden"], cfg["intermediate"], cfg["vocab"]
    keys = jax.random.split(key, 2 + cfg["layers"] * 7)
    std = 0.02

    def norm(k, shape):
        return jax.random.normal(k, shape, dtype=jnp.float32) * std

    params = {
        "embed_tokens": norm(keys[0], (V, H)),
        "final_norm": jnp.ones((H,), dtype=jnp.float32),
        "layers": [],
    }
    ki = 2
    for _ in range(cfg["layers"]):
        params["layers"].append({
            "input_layernorm": jnp.ones((H,), dtype=jnp.float32),
            "post_attention_layernorm": jnp.ones((H,), dtype=jnp.float32),
            "q_proj": norm(keys[ki + 0], (H, H)),
            "k_proj": norm(keys[ki + 1], (H, H)),
            "v_proj": norm(keys[ki + 2], (H, H)),
            "o_proj": norm(keys[ki + 3], (H, H)),
            "gate_proj": norm(keys[ki + 4], (H, I)),
            "up_proj": norm(keys[ki + 5], (H, I)),
            "down_proj": norm(keys[ki + 6], (I, H)),
        })
        ki += 7
    return params


# ------------------------------- forward pass -------------------------------

def context_tower_forward(params, input_ids, inputs_embeds, attention_mask, cfg):
    """Mirrors CcubedContextTower.forward: run the tower with
    output_hidden_states=True, then feature_select(hidden_states[select_layer])."""
    if inputs_embeds is None:
        inputs_embeds = jnp.take(params["embed_tokens"], input_ids, axis=0)
    B, S, H = inputs_embeds.shape
    HD = cfg["head_dim"]
    num_layers = len(params["layers"])

    # HF hidden_states has num_layers+1 entries; resolve negative indices here
    # and only compute what the selected entry actually needs (dead-layer skip).
    idx = cfg["select_layer"]
    if idx < 0:
        idx = num_layers + 1 + idx
    assert 0 <= idx <= num_layers

    h = inputs_embeds.astype(jnp.float32).reshape(B * S, H)
    if idx == 0:
        return h.reshape(B, S, H)             # embeddings output

    # RoPE tables, computed once (identical for every layer).
    pos = jnp.arange(S, dtype=jnp.float32)
    inv_freq = 1.0 / (10000.0 ** (jnp.arange(0, HD, 2, dtype=jnp.float32) / HD))
    freqs = jnp.outer(pos, inv_freq)          # (S, HD/2)
    cos, sin = jnp.cos(freqs), jnp.sin(freqs)
    mask_f = attention_mask.astype(jnp.float32)

    layers_needed = num_layers if idx == num_layers else idx
    for li in range(layers_needed):
        layer = params["layers"][li]
        lw = {
            "ln1": layer["input_layernorm"].reshape(1, H),
            "wqkv": jnp.concatenate(
                [layer["q_proj"], layer["k_proj"], layer["v_proj"]],
                axis=1).astype(jnp.bfloat16),
            "wo": layer["o_proj"].astype(jnp.bfloat16),
            "ln2": layer["post_attention_layernorm"].reshape(1, H),
            "wgu": jnp.concatenate(
                [layer["gate_proj"], layer["up_proj"]],
                axis=1).astype(jnp.bfloat16),
            "wdn": layer["down_proj"].astype(jnp.bfloat16),
        }
        h = fused_layer(h, mask_f, cos, sin, lw, cfg)

    if idx == num_layers:                      # last entry = final-norm output
        h = pallas_rmsnorm(h, params["final_norm"])
    return h.reshape(B, S, H)


# ----------------------------------- main -----------------------------------

if __name__ == "__main__":
    cfg = {
        "vocab": 128,
        "hidden": 32,
        "heads": 4,
        "head_dim": 8,
        "intermediate": 64,
        "layers": 2,
        "select_layer": -2,   # config.context_feature_layer
    }
    B, S = 2, 8

    key = jax.random.PRNGKey(0)
    k_param, k_ids = jax.random.split(key)
    params = init_params(k_param, cfg)

    input_ids = jax.random.randint(k_ids, (B, S), 0, cfg["vocab"], dtype=jnp.int32)
    # second sequence has 2 padded positions at the end
    attention_mask = jnp.array(
        [[1, 1, 1, 1, 1, 1, 1, 1],
         [1, 1, 1, 1, 1, 1, 0, 0]], dtype=jnp.int32)

    forward = jax.jit(
        lambda p, ids, m: context_tower_forward(p, ids, None, m, cfg))
    features = jax.block_until_ready(forward(params, input_ids, attention_mask))

    assert features.shape == (B, S, cfg["hidden"])
    assert bool(jnp.all(jnp.isfinite(features)))
    print("KERNEL_OK")
</pallas_src>

<mosaic_0001>
module attributes {stable_mosaic.version = 11 : i64} {
  func.func @_fused_layer_kernel(%arg0: i32, %arg1: memref<16x32xf32, #tpu.memory_space<vmem>>, %arg2: memref<2x8xf32, #tpu.memory_space<vmem>>, %arg3: memref<8x4xf32, #tpu.memory_space<vmem>>, %arg4: memref<8x4xf32, #tpu.memory_space<vmem>>, %arg5: memref<1x32xf32, #tpu.memory_space<vmem>>, %arg6: memref<32x96xbf16, #tpu.memory_space<vmem>>, %arg7: memref<32x32xbf16, #tpu.memory_space<vmem>>, %arg8: memref<1x32xf32, #tpu.memory_space<vmem>>, %arg9: memref<32x128xbf16, #tpu.memory_space<vmem>>, %arg10: memref<64x32xbf16, #tpu.memory_space<vmem>>, %arg11: memref<16x32xf32, #tpu.memory_space<vmem>>) attributes {dimension_semantics = [#tpu.dimension_semantics<arbitrary>], iteration_bounds = array<i64: 1>, scalar_prefetch = 0 : i64, scratch_operands = 0 : i64, tpu.core_type = #tpu.core_type<tc>, window_params = [{pipeline_mode = #tpu.pipeline_mode<synchronous>, transform_indices = @transform_0, window_bounds = array<i64: 16, 32>}, {pipeline_mode = #tpu.pipeline_mode<synchronous>, transform_indices = @transform_1, window_bounds = array<i64: 2, 8>}, {pipeline_mode = #tpu.pipeline_mode<synchronous>, transform_indices = @transform_2, window_bounds = array<i64: 8, 4>}, {pipeline_mode = #tpu.pipeline_mode<synchronous>, transform_indices = @transform_3, window_bounds = array<i64: 8, 4>}, {pipeline_mode = #tpu.pipeline_mode<synchronous>, transform_indices = @transform_4, window_bounds = array<i64: 1, 32>}, {pipeline_mode = #tpu.pipeline_mode<synchronous>, transform_indices = @transform_5, window_bounds = array<i64: 32, 96>}, {pipeline_mode = #tpu.pipeline_mode<synchronous>, transform_indices = @transform_6, window_bounds = array<i64: 32, 32>}, {pipeline_mode = #tpu.pipeline_mode<synchronous>, transform_indices = @transform_7, window_bounds = array<i64: 1, 32>}, {pipeline_mode = #tpu.pipeline_mode<synchronous>, transform_indices = @transform_8, window_bounds = array<i64: 32, 128>}, {pipeline_mode = #tpu.pipeline_mode<synchronous>, transform_indices = @transform_9, window_bounds = array<i64: 64, 32>}, {pipeline_mode = #tpu.pipeline_mode<synchronous>, transform_indices = @transform_10, window_bounds = array<i64: 16, 32>}]} {
    %c0 = arith.constant 0 : index
    %c0_0 = arith.constant 0 : index
    %0 = vector.load %arg1[%c0, %c0_0] : memref<16x32xf32, #tpu.memory_space<vmem>>, vector<16x32xf32>
    %c0_1 = arith.constant 0 : index
    %c0_2 = arith.constant 0 : index
    %1 = vector.load %arg3[%c0_1, %c0_2] : memref<8x4xf32, #tpu.memory_space<vmem>>, vector<8x4xf32>
    %c0_3 = arith.constant 0 : index
    %c0_4 = arith.constant 0 : index
    %2 = vector.load %arg4[%c0_3, %c0_4] : memref<8x4xf32, #tpu.memory_space<vmem>>, vector<8x4xf32>
    %c0_5 = arith.constant 0 : index
    %c0_6 = arith.constant 0 : index
    %3 = vector.load %arg2[%c0_5, %c0_6] : memref<2x8xf32, #tpu.memory_space<vmem>>, vector<2x8xf32>
    %c0_7 = arith.constant 0 : index
    %c0_8 = arith.constant 0 : index
    %4 = vector.load %arg5[%c0_7, %c0_8] : memref<1x32xf32, #tpu.memory_space<vmem>>, vector<1x32xf32>
    %5 = arith.mulf %0, %0 : vector<16x32xf32>
    %cst = arith.constant dense<0.000000e+00> : vector<16xf32>
    %6 = vector.multi_reduction <add>, %5, %cst [1] : vector<16x32xf32> to vector<16xf32>
    %7 = vector.shape_cast %6 : vector<16xf32> to vector<16x1xf32>
    %cst_9 = arith.constant 3.200000e+01 : f32
    %8 = vector.broadcast %cst_9 : f32 to vector<16x1xf32>
    %9 = arith.divf %7, %8 : vector<16x1xf32>
    %cst_10 = arith.constant 9.99999997E-7 : f32
    %10 = vector.broadcast %cst_10 : f32 to vector<16x1xf32>
    %11 = arith.addf %9, %10 : vector<16x1xf32>
    %12 = math.rsqrt %11 : vector<16x1xf32>
    %13 = vector.broadcast %12 : vector<16x1xf32> to vector<16x32xf32>
    %14 = arith.mulf %0, %13 : vector<16x32xf32>
    %15 = vector.broadcast %4 : vector<1x32xf32> to vector<16x32xf32>
    %16 = arith.mulf %14, %15 : vector<16x32xf32>
    %c0_11 = arith.constant 0 : index
    %c0_12 = arith.constant 0 : index
    %17 = vector.load %arg6[%c0_11, %c0_12] : memref<32x96xbf16, #tpu.memory_space<vmem>>, vector<32x96xbf16>
    %18 = arith.truncf %16 : vector<16x32xf32> to vector<16x32xbf16>
    %cst_13 = arith.constant dense<0.000000e+00> : vector<16x96xf32>
    %19 = tpu.matmul %18, %17, %cst_13 {dimension_numbers = #tpu.dot_dimension_numbers<[1], [0], [0], [1], [0, 0, 1, 1], [], []>} : vector<16x32xbf16>, vector<32x96xbf16>, vector<16x96xf32> -> vector<16x96xf32>
    %20 = tpu.iota {dimensions = array<i32: 0>} : vector<8x8xi32>
    %21 = tpu.iota {dimensions = array<i32: 1>} : vector<8x8xi32>
    %22 = arith.cmpi sge, %20, %21 : vector<8x8xi32>
    %23 = vector.extract_strided_slice %3 {offsets = [0, 0], sizes = [1, 8], strides = [1, 1]} : vector<2x8xf32> to vector<1x8xf32>
    %cst_14 = arith.constant 5.000000e-01 : f32
    %24 = vector.broadcast %cst_14 : f32 to vector<1x8xf32>
    %25 = arith.cmpf ogt, %23, %24 : vector<1x8xf32>
    %26 = vector.broadcast %25 : vector<1x8xi1> to vector<8x8xi1>
    %27 = arith.andi %22, %26 : vector<8x8xi1>
    %cst_15 = arith.constant 0.000000e+00 : f32
    %cst_16 = arith.constant -1.000000e+09 : f32
    %28 = vector.broadcast %cst_15 : f32 to vector<8x8xf32>
    %29 = vector.broadcast %cst_16 : f32 to vector<8x8xf32>
    %30 = arith.select %27, %28, %29 : vector<8x8xi1>, vector<8x8xf32>
    %31 = vector.extract_strided_slice %19 {offsets = [0, 0], sizes = [8, 8], strides = [1, 1]} : vector<16x96xf32> to vector<8x8xf32>
    %32 = vector.extract_strided_slice %31 {offsets = [0, 0], sizes = [8, 4], strides = [1, 1]} : vector<8x8xf32> to vector<8x4xf32>
    %33 = vector.extract_strided_slice %31 {offsets = [0, 4], sizes = [8, 4], strides = [1, 1]} : vector<8x8xf32> to vector<8x4xf32>
    %34 = arith.mulf %32, %1 : vector<8x4xf32>
    %35 = arith.mulf %33, %2 : vector<8x4xf32>
    %36 = arith.subf %34, %35 : vector<8x4xf32>
    %37 = arith.mulf %33, %1 : vector<8x4xf32>
    %38 = arith.mulf %32, %2 : vector<8x4xf32>
    %39 = arith.addf %37, %38 : vector<8x4xf32>
    %40 = tpu.concatenate %36, %39 in 1 : vector<8x4xf32>, vector<8x4xf32> -> vector<8x8xf32>
    %41 = vector.extract_strided_slice %19 {offsets = [0, 32], sizes = [8, 8], strides = [1, 1]} : vector<16x96xf32> to vector<8x8xf32>
    %42 = vector.extract_strided_slice %41 {offsets = [0, 0], sizes = [8, 4], strides = [1, 1]} : vector<8x8xf32> to vector<8x4xf32>
    %43 = vector.extract_strided_slice %41 {offsets = [0, 4], sizes = [8, 4], strides = [1, 1]} : vector<8x8xf32> to vector<8x4xf32>
    %44 = arith.mulf %42, %1 : vector<8x4xf32>
    %45 = arith.mulf %43, %2 : vector<8x4xf32>
    %46 = arith.subf %44, %45 : vector<8x4xf32>
    %47 = arith.mulf %43, %1 : vector<8x4xf32>
    %48 = arith.mulf %42, %2 : vector<8x4xf32>
    %49 = arith.addf %47, %48 : vector<8x4xf32>
    %50 = tpu.concatenate %46, %49 in 1 : vector<8x4xf32>, vector<8x4xf32> -> vector<8x8xf32>
    %51 = vector.extract_strided_slice %19 {offsets = [0, 64], sizes = [8, 8], strides = [1, 1]} : vector<16x96xf32> to vector<8x8xf32>
    %52 = arith.truncf %40 : vector<8x8xf32> to vector<8x8xbf16>
    %53 = arith.truncf %50 : vector<8x8xf32> to vector<8x8xbf16>
    %cst_17 = arith.constant dense<0.000000e+00> : vector<8x8xf32>
    %54 = tpu.matmul %52, %53, %cst_17 {dimension_numbers = #tpu.dot_dimension_numbers<[1], [1], [0], [0], [0, 0, 1, 0], [], []>} : vector<8x8xbf16>, vector<8x8xbf16>, vector<8x8xf32> -> vector<8x8xf32>
    %cst_18 = arith.constant 0.353553385 : f32
    %55 = vector.broadcast %cst_18 : f32 to vector<8x8xf32>
    %56 = arith.mulf %54, %55 : vector<8x8xf32>
    %57 = arith.addf %56, %30 : vector<8x8xf32>
    %cst_19 = arith.constant dense<0xFF800000> : vector<8xf32>
    %58 = vector.multi_reduction <maximumf>, %57, %cst_19 [1] : vector<8x8xf32> to vector<8xf32>
    %59 = vector.shape_cast %58 : vector<8xf32> to vector<8x1xf32>
    %60 = vector.broadcast %59 : vector<8x1xf32> to vector<8x8xf32>
    %61 = arith.subf %57, %60 : vector<8x8xf32>
    %62 = math.exp %61 : vector<8x8xf32>
    %cst_20 = arith.constant dense<0.000000e+00> : vector<8xf32>
    %63 = vector.multi_reduction <add>, %62, %cst_20 [1] : vector<8x8xf32> to vector<8xf32>
    %64 = vector.shape_cast %63 : vector<8xf32> to vector<8x1xf32>
    %65 = tpu.reciprocal %64 {approx = true} : vector<8x1xf32> -> vector<8x1xf32>
    %66 = arith.truncf %62 : vector<8x8xf32> to vector<8x8xbf16>
    %67 = arith.truncf %51 : vector<8x8xf32> to vector<8x8xbf16>
    %cst_21 = arith.constant dense<0.000000e+00> : vector<8x8xf32>
    %68 = tpu.matmul %66, %67, %cst_21 {dimension_numbers = #tpu.dot_dimension_numbers<[1], [0], [0], [1], [0, 0, 1, 1], [], []>} : vector<8x8xbf16>, vector<8x8xbf16>, vector<8x8xf32> -> vector<8x8xf32>
    %69 = vector.broadcast %65 : vector<8x1xf32> to vector<8x8xf32>
    %70 = arith.mulf %68, %69 : vector<8x8xf32>
    %71 = vector.extract_strided_slice %19 {offsets = [0, 8], sizes = [8, 8], strides = [1, 1]} : vector<16x96xf32> to vector<8x8xf32>
    %72 = vector.extract_strided_slice %71 {offsets = [0, 0], sizes = [8, 4], strides = [1, 1]} : vector<8x8xf32> to vector<8x4xf32>
    %73 = vector.extract_strided_slice %71 {offsets = [0, 4], sizes = [8, 4], strides = [1, 1]} : vector<8x8xf32> to vector<8x4xf32>
    %74 = arith.mulf %72, %1 : vector<8x4xf32>
    %75 = arith.mulf %73, %2 : vector<8x4xf32>
    %76 = arith.subf %74, %75 : vector<8x4xf32>
    %77 = arith.mulf %73, %1 : vector<8x4xf32>
    %78 = arith.mulf %72, %2 : vector<8x4xf32>
    %79 = arith.addf %77, %78 : vector<8x4xf32>
    %80 = tpu.concatenate %76, %79 in 1 : vector<8x4xf32>, vector<8x4xf32> -> vector<8x8xf32>
    %81 = vector.extract_strided_slice %19 {offsets = [0, 40], sizes = [8, 8], strides = [1, 1]} : vector<16x96xf32> to vector<8x8xf32>
    %82 = vector.extract_strided_slice %81 {offsets = [0, 0], sizes = [8, 4], strides = [1, 1]} : vector<8x8xf32> to vector<8x4xf32>
    %83 = vector.extract_strided_slice %81 {offsets = [0, 4], sizes = [8, 4], strides = [1, 1]} : vector<8x8xf32> to vector<8x4xf32>
    %84 = arith.mulf %82, %1 : vector<8x4xf32>
    %85 = arith.mulf %83, %2 : vector<8x4xf32>
    %86 = arith.subf %84, %85 : vector<8x4xf32>
    %87 = arith.mulf %83, %1 : vector<8x4xf32>
    %88 = arith.mulf %82, %2 : vector<8x4xf32>
    %89 = arith.addf %87, %88 : vector<8x4xf32>
    %90 = tpu.concatenate %86, %89 in 1 : vector<8x4xf32>, vector<8x4xf32> -> vector<8x8xf32>
    %91 = vector.extract_strided_slice %19 {offsets = [0, 72], sizes = [8, 8], strides = [1, 1]} : vector<16x96xf32> to vector<8x8xf32>
    %92 = arith.truncf %80 : vector<8x8xf32> to vector<8x8xbf16>
    %93 = arith.truncf %90 : vector<8x8xf32> to vector<8x8xbf16>
    %cst_22 = arith.constant dense<0.000000e+00> : vector<8x8xf32>
    %94 = tpu.matmul %92, %93, %cst_22 {dimension_numbers = #tpu.dot_dimension_numbers<[1], [1], [0], [0], [0, 0, 1, 0], [], []>} : vector<8x8xbf16>, vector<8x8xbf16>, vector<8x8xf32> -> vector<8x8xf32>
    %cst_23 = arith.constant 0.353553385 : f32
    %95 = vector.broadcast %cst_23 : f32 to vector<8x8xf32>
    %96 = arith.mulf %94, %95 : vector<8x8xf32>
    %97 = arith.addf %96, %30 : vector<8x8xf32>
    %cst_24 = arith.constant dense<0xFF800000> : vector<8xf32>
    %98 = vector.multi_reduction <maximumf>, %97, %cst_24 [1] : vector<8x8xf32> to vector<8xf32>
    %99 = vector.shape_cast %98 : vector<8xf32> to vector<8x1xf32>
    %100 = vector.broadcast %99 : vector<8x1xf32> to vector<8x8xf32>
    %101 = arith.subf %97, %100 : vector<8x8xf32>
    %102 = math.exp %101 : vector<8x8xf32>
    %cst_25 = arith.constant dense<0.000000e+00> : vector<8xf32>
    %103 = vector.multi_reduction <add>, %102, %cst_25 [1] : vector<8x8xf32> to vector<8xf32>
    %104 = vector.shape_cast %103 : vector<8xf32> to vector<8x1xf32>
    %105 = tpu.reciprocal %104 {approx = true} : vector<8x1xf32> -> vector<8x1xf32>
    %106 = arith.truncf %102 : vector<8x8xf32> to vector<8x8xbf16>
    %107 = arith.truncf %91 : vector<8x8xf32> to vector<8x8xbf16>
    %cst_26 = arith.constant dense<0.000000e+00> : vector<8x8xf32>
    %108 = tpu.matmul %106, %107, %cst_26 {dimension_numbers = #tpu.dot_dimension_numbers<[1], [0], [0], [1], [0, 0, 1, 1], [], []>} : vector<8x8xbf16>, vector<8x8xbf16>, vector<8x8xf32> -> vector<8x8xf32>
    %109 = vector.broadcast %105 : vector<8x1xf32> to vector<8x8xf32>
    %110 = arith.mulf %108, %109 : vector<8x8xf32>
    %111 = vector.extract_strided_slice %19 {offsets = [0, 16], sizes = [8, 8], strides = [1, 1]} : vector<16x96xf32> to vector<8x8xf32>
    %112 = vector.extract_strided_slice %111 {offsets = [0, 0], sizes = [8, 4], strides = [1, 1]} : vector<8x8xf32> to vector<8x4xf32>
    %113 = vector.extract_strided_slice %111 {offsets = [0, 4], sizes = [8, 4], strides = [1, 1]} : vector<8x8xf32> to vector<8x4xf32>
    %114 = arith.mulf %112, %1 : vector<8x4xf32>
    %115 = arith.mulf %113, %2 : vector<8x4xf32>
    %116 = arith.subf %114, %115 : vector<8x4xf32>
    %117 = arith.mulf %113, %1 : vector<8x4xf32>
    %118 = arith.mulf %112, %2 : vector<8x4xf32>
    %119 = arith.addf %117, %118 : vector<8x4xf32>
    %120 = tpu.concatenate %116, %119 in 1 : vector<8x4xf32>, vector<8x4xf32> -> vector<8x8xf32>
    %121 = vector.extract_strided_slice %19 {offsets = [0, 48], sizes = [8, 8], strides = [1, 1]} : vector<16x96xf32> to vector<8x8xf32>
    %122 = vector.extract_strided_slice %121 {offsets = [0, 0], sizes = [8, 4], strides = [1, 1]} : vector<8x8xf32> to vector<8x4xf32>
    %123 = vector.extract_strided_slice %121 {offsets = [0, 4], sizes = [8, 4], strides = [1, 1]} : vector<8x8xf32> to vector<8x4xf32>
    %124 = arith.mulf %122, %1 : vector<8x4xf32>
    %125 = arith.mulf %123, %2 : vector<8x4xf32>
    %126 = arith.subf %124, %125 : vector<8x4xf32>
    %127 = arith.mulf %123, %1 : vector<8x4xf32>
    %128 = arith.mulf %122, %2 : vector<8x4xf32>
    %129 = arith.addf %127, %128 : vector<8x4xf32>
    %130 = tpu.concatenate %126, %129 in 1 : vector<8x4xf32>, vector<8x4xf32> -> vector<8x8xf32>
    %131 = vector.extract_strided_slice %19 {offsets = [0, 80], sizes = [8, 8], strides = [1, 1]} : vector<16x96xf32> to vector<8x8xf32>
    %132 = arith.truncf %120 : vector<8x8xf32> to vector<8x8xbf16>
    %133 = arith.truncf %130 : vector<8x8xf32> to vector<8x8xbf16>
    %cst_27 = arith.constant dense<0.000000e+00> : vector<8x8xf32>
    %134 = tpu.matmul %132, %133, %cst_27 {dimension_numbers = #tpu.dot_dimension_numbers<[1], [1], [0], [0], [0, 0, 1, 0], [], []>} : vector<8x8xbf16>, vector<8x8xbf16>, vector<8x8xf32> -> vector<8x8xf32>
    %cst_28 = arith.constant 0.353553385 : f32
    %135 = vector.broadcast %cst_28 : f32 to vector<8x8xf32>
    %136 = arith.mulf %134, %135 : vector<8x8xf32>
    %137 = arith.addf %136, %30 : vector<8x8xf32>
    %cst_29 = arith.constant dense<0xFF800000> : vector<8xf32>
    %138 = vector.multi_reduction <maximumf>, %137, %cst_29 [1] : vector<8x8xf32> to vector<8xf32>
    %139 = vector.shape_cast %138 : vector<8xf32> to vector<8x1xf32>
    %140 = vector.broadcast %139 : vector<8x1xf32> to vector<8x8xf32>
    %141 = arith.subf %137, %140 : vector<8x8xf32>
    %142 = math.exp %141 : vector<8x8xf32>
    %cst_30 = arith.constant dense<0.000000e+00> : vector<8xf32>
    %143 = vector.multi_reduction <add>, %142, %cst_30 [1] : vector<8x8xf32> to vector<8xf32>
    %144 = vector.shape_cast %143 : vector<8xf32> to vector<8x1xf32>
    %145 = tpu.reciprocal %144 {approx = true} : vector<8x1xf32> -> vector<8x1xf32>
    %146 = arith.truncf %142 : vector<8x8xf32> to vector<8x8xbf16>
    %147 = arith.truncf %131 : vector<8x8xf32> to vector<8x8xbf16>
    %cst_31 = arith.constant dense<0.000000e+00> : vector<8x8xf32>
    %148 = tpu.matmul %146, %147, %cst_31 {dimension_numbers = #tpu.dot_dimension_numbers<[1], [0], [0], [1], [0, 0, 1, 1], [], []>} : vector<8x8xbf16>, vector<8x8xbf16>, vector<8x8xf32> -> vector<8x8xf32>
    %149 = vector.broadcast %145 : vector<8x1xf32> to vector<8x8xf32>
    %150 = arith.mulf %148, %149 : vector<8x8xf32>
    %151 = vector.extract_strided_slice %19 {offsets = [0, 24], sizes = [8, 8], strides = [1, 1]} : vector<16x96xf32> to vector<8x8xf32>
    %152 = vector.extract_strided_slice %151 {offsets = [0, 0], sizes = [8, 4], strides = [1, 1]} : vector<8x8xf32> to vector<8x4xf32>
    %153 = vector.extract_strided_slice %151 {offsets = [0, 4], sizes = [8, 4], strides = [1, 1]} : vector<8x8xf32> to vector<8x4xf32>
    %154 = arith.mulf %152, %1 : vector<8x4xf32>
    %155 = arith.mulf %153, %2 : vector<8x4xf32>
    %156 = arith.subf %154, %155 : vector<8x4xf32>
    %157 = arith.mulf %153, %1 : vector<8x4xf32>
    %158 = arith.mulf %152, %2 : vector<8x4xf32>
    %159 = arith.addf %157, %158 : vector<8x4xf32>
    %160 = tpu.concatenate %156, %159 in 1 : vector<8x4xf32>, vector<8x4xf32> -> vector<8x8xf32>
    %161 = vector.extract_strided_slice %19 {offsets = [0, 56], sizes = [8, 8], strides = [1, 1]} : vector<16x96xf32> to vector<8x8xf32>
    %162 = vector.extract_strided_slice %161 {offsets = [0, 0], sizes = [8, 4], strides = [1, 1]} : vector<8x8xf32> to vector<8x4xf32>
    %163 = vector.extract_strided_slice %161 {offsets = [0, 4], sizes = [8, 4], strides = [1, 1]} : vector<8x8xf32> to vector<8x4xf32>
    %164 = arith.mulf %162, %1 : vector<8x4xf32>
    %165 = arith.mulf %163, %2 : vector<8x4xf32>
    %166 = arith.subf %164, %165 : vector<8x4xf32>
    %167 = arith.mulf %163, %1 : vector<8x4xf32>
    %168 = arith.mulf %162, %2 : vector<8x4xf32>
    %169 = arith.addf %167, %168 : vector<8x4xf32>
    %170 = tpu.concatenate %166, %169 in 1 : vector<8x4xf32>, vector<8x4xf32> -> vector<8x8xf32>
    %171 = vector.extract_strided_slice %19 {offsets = [0, 88], sizes = [8, 8], strides = [1, 1]} : vector<16x96xf32> to vector<8x8xf32>
    %172 = arith.truncf %160 : vector<8x8xf32> to vector<8x8xbf16>
    %173 = arith.truncf %170 : vector<8x8xf32> to vector<8x8xbf16>
    %cst_32 = arith.constant dense<0.000000e+00> : vector<8x8xf32>
    %174 = tpu.matmul %172, %173, %cst_32 {dimension_numbers = #tpu.dot_dimension_numbers<[1], [1], [0], [0], [0, 0, 1, 0], [], []>} : vector<8x8xbf16>, vector<8x8xbf16>, vector<8x8xf32> -> vector<8x8xf32>
    %cst_33 = arith.constant 0.353553385 : f32
    %175 = vector.broadcast %cst_33 : f32 to vector<8x8xf32>
    %176 = arith.mulf %174, %175 : vector<8x8xf32>
    %177 = arith.addf %176, %30 : vector<8x8xf32>
    %cst_34 = arith.constant dense<0xFF800000> : vector<8xf32>
    %178 = vector.multi_reduction <maximumf>, %177, %cst_34 [1] : vector<8x8xf32> to vector<8xf32>
    %179 = vector.shape_cast %178 : vector<8xf32> to vector<8x1xf32>
    %180 = vector.broadcast %179 : vector<8x1xf32> to vector<8x8xf32>
    %181 = arith.subf %177, %180 : vector<8x8xf32>
    %182 = math.exp %181 : vector<8x8xf32>
    %cst_35 = arith.constant dense<0.000000e+00> : vector<8xf32>
    %183 = vector.multi_reduction <add>, %182, %cst_35 [1] : vector<8x8xf32> to vector<8xf32>
    %184 = vector.shape_cast %183 : vector<8xf32> to vector<8x1xf32>
    %185 = tpu.reciprocal %184 {approx = true} : vector<8x1xf32> -> vector<8x1xf32>
    %186 = arith.truncf %182 : vector<8x8xf32> to vector<8x8xbf16>
    %187 = arith.truncf %171 : vector<8x8xf32> to vector<8x8xbf16>
    %cst_36 = arith.constant dense<0.000000e+00> : vector<8x8xf32>
    %188 = tpu.matmul %186, %187, %cst_36 {dimension_numbers = #tpu.dot_dimension_numbers<[1], [0], [0], [1], [0, 0, 1, 1], [], []>} : vector<8x8xbf16>, vector<8x8xbf16>, vector<8x8xf32> -> vector<8x8xf32>
    %189 = vector.broadcast %185 : vector<8x1xf32> to vector<8x8xf32>
    %190 = arith.mulf %188, %189 : vector<8x8xf32>
    %191 = tpu.concatenate %70, %110, %150, %190 in 1 : vector<8x8xf32>, vector<8x8xf32>, vector<8x8xf32>, vector<8x8xf32> -> vector<8x32xf32>
    %192 = vector.extract_strided_slice %3 {offsets = [1, 0], sizes = [1, 8], strides = [1, 1]} : vector<2x8xf32> to vector<1x8xf32>
    %cst_37 = arith.constant 5.000000e-01 : f32
    %193 = vector.broadcast %cst_37 : f32 to vector<1x8xf32>
    %194 = arith.cmpf ogt, %192, %193 : vector<1x8xf32>
    %195 = vector.broadcast %194 : vector<1x8xi1> to vector<8x8xi1>
    %196 = arith.andi %22, %195 : vector<8x8xi1>
    %cst_38 = arith.constant 0.000000e+00 : f32
    %cst_39 = arith.constant -1.000000e+09 : f32
    %197 = vector.broadcast %cst_38 : f32 to vector<8x8xf32>
    %198 = vector.broadcast %cst_39 : f32 to vector<8x8xf32>
    %199 = arith.select %196, %197, %198 : vector<8x8xi1>, vector<8x8xf32>
    %200 = vector.extract_strided_slice %19 {offsets = [8, 0], sizes = [8, 8], strides = [1, 1]} : vector<16x96xf32> to vector<8x8xf32>
    %201 = vector.extract_strided_slice %200 {offsets = [0, 0], sizes = [8, 4], strides = [1, 1]} : vector<8x8xf32> to vector<8x4xf32>
    %202 = vector.extract_strided_slice %200 {offsets = [0, 4], sizes = [8, 4], strides = [1, 1]} : vector<8x8xf32> to vector<8x4xf32>
    %203 = arith.mulf %201, %1 : vector<8x4xf32>
    %204 = arith.mulf %202, %2 : vector<8x4xf32>
    %205 = arith.subf %203, %204 : vector<8x4xf32>
    %206 = arith.mulf %202, %1 : vector<8x4xf32>
    %207 = arith.mulf %201, %2 : vector<8x4xf32>
    %208 = arith.addf %206, %207 : vector<8x4xf32>
    %209 = tpu.concatenate %205, %208 in 1 : vector<8x4xf32>, vector<8x4xf32> -> vector<8x8xf32>
    %210 = vector.extract_strided_slice %19 {offsets = [8, 32], sizes = [8, 8], strides = [1, 1]} : vector<16x96xf32> to vector<8x8xf32>
    %211 = vector.extract_strided_slice %210 {offsets = [0, 0], sizes = [8, 4], strides = [1, 1]} : vector<8x8xf32> to vector<8x4xf32>
    %212 = vector.extract_strided_slice %210 {offsets = [0, 4], sizes = [8, 4], strides = [1, 1]} : vector<8x8xf32> to vector<8x4xf32>
    %213 = arith.mulf %211, %1 : vector<8x4xf32>
    %214 = arith.mulf %212, %2 : vector<8x4xf32>
    %215 = arith.subf %213, %214 : vector<8x4xf32>
    %216 = arith.mulf %212, %1 : vector<8x4xf32>
    %217 = arith.mulf %211, %2 : vector<8x4xf32>
    %218 = arith.addf %216, %217 : vector<8x4xf32>
    %219 = tpu.concatenate %215, %218 in 1 : vector<8x4xf32>, vector<8x4xf32> -> vector<8x8xf32>
    %220 = vector.extract_strided_slice %19 {offsets = [8, 64], sizes = [8, 8], strides = [1, 1]} : vector<16x96xf32> to vector<8x8xf32>
    %221 = arith.truncf %209 : vector<8x8xf32> to vector<8x8xbf16>
    %222 = arith.truncf %219 : vector<8x8xf32> to vector<8x8xbf16>
    %cst_40 = arith.constant dense<0.000000e+00> : vector<8x8xf32>
    %223 = tpu.matmul %221, %222, %cst_40 {dimension_numbers = #tpu.dot_dimension_numbers<[1], [1], [0], [0], [0, 0, 1, 0], [], []>} : vector<8x8xbf16>, vector<8x8xbf16>, vector<8x8xf32> -> vector<8x8xf32>
    %cst_41 = arith.constant 0.353553385 : f32
    %224 = vector.broadcast %cst_41 : f32 to vector<8x8xf32>
    %225 = arith.mulf %223, %224 : vector<8x8xf32>
    %226 = arith.addf %225, %199 : vector<8x8xf32>
    %cst_42 = arith.constant dense<0xFF800000> : vector<8xf32>
    %227 = vector.multi_reduction <maximumf>, %226, %cst_42 [1] : vector<8x8xf32> to vector<8xf32>
    %228 = vector.shape_cast %227 : vector<8xf32> to vector<8x1xf32>
    %229 = vector.broadcast %228 : vector<8x1xf32> to vector<8x8xf32>
    %230 = arith.subf %226, %229 : vector<8x8xf32>
    %231 = math.exp %230 : vector<8x8xf32>
    %cst_43 = arith.constant dense<0.000000e+00> : vector<8xf32>
    %232 = vector.multi_reduction <add>, %231, %cst_43 [1] : vector<8x8xf32> to vector<8xf32>
    %233 = vector.shape_cast %232 : vector<8xf32> to vector<8x1xf32>
    %234 = tpu.reciprocal %233 {approx = true} : vector<8x1xf32> -> vector<8x1xf32>
    %235 = arith.truncf %231 : vector<8x8xf32> to vector<8x8xbf16>
    %236 = arith.truncf %220 : vector<8x8xf32> to vector<8x8xbf16>
    %cst_44 = arith.constant dense<0.000000e+00> : vector<8x8xf32>
    %237 = tpu.matmul %235, %236, %cst_44 {dimension_numbers = #tpu.dot_dimension_numbers<[1], [0], [0], [1], [0, 0, 1, 1], [], []>} : vector<8x8xbf16>, vector<8x8xbf16>, vector<8x8xf32> -> vector<8x8xf32>
    %238 = vector.broadcast %234 : vector<8x1xf32> to vector<8x8xf32>
    %239 = arith.mulf %237, %238 : vector<8x8xf32>
    %240 = vector.extract_strided_slice %19 {offsets = [8, 8], sizes = [8, 8], strides = [1, 1]} : vector<16x96xf32> to vector<8x8xf32>
    %241 = vector.extract_strided_slice %240 {offsets = [0, 0], sizes = [8, 4], strides = [1, 1]} : vector<8x8xf32> to vector<8x4xf32>
    %242 = vector.extract_strided_slice %240 {offsets = [0, 4], sizes = [8, 4], strides = [1, 1]} : vector<8x8xf32> to vector<8x4xf32>
    %243 = arith.mulf %241, %1 : vector<8x4xf32>
    %244 = arith.mulf %242, %2 : vector<8x4xf32>
    %245 = arith.subf %243, %244 : vector<8x4xf32>
    %246 = arith.mulf %242, %1 : vector<8x4xf32>
    %247 = arith.mulf %241, %2 : vector<8x4xf32>
    %248 = arith.addf %246, %247 : vector<8x4xf32>
    %249 = tpu.concatenate %245, %248 in 1 : vector<8x4xf32>, vector<8x4xf32> -> vector<8x8xf32>
    %250 = vector.extract_strided_slice %19 {offsets = [8, 40], sizes = [8, 8], strides = [1, 1]} : vector<16x96xf32> to vector<8x8xf32>
    %251 = vector.extract_strided_slice %250 {offsets = [0, 0], sizes = [8, 4], strides = [1, 1]} : vector<8x8xf32> to vector<8x4xf32>
    %252 = vector.extract_strided_slice %250 {offsets = [0, 4], sizes = [8, 4], strides = [1, 1]} : vector<8x8xf32> to vector<8x4xf32>
    %253 = arith.mulf %251, %1 : vector<8x4xf32>
    %254 = arith.mulf %252, %2 : vector<8x4xf32>
    %255 = arith.subf %253, %254 : vector<8x4xf32>
    %256 = arith.mulf %252, %1 : vector<8x4xf32>
    %257 = arith.mulf %251, %2 : vector<8x4xf32>
    %258 = arith.addf %256, %257 : vector<8x4xf32>
    %259 = tpu.concatenate %255, %258 in 1 : vector<8x4xf32>, vector<8x4xf32> -> vector<8x8xf32>
    %260 = vector.extract_strided_slice %19 {offsets = [8, 72], sizes = [8, 8], strides = [1, 1]} : vector<16x96xf32> to vector<8x8xf32>
    %261 = arith.truncf %249 : vector<8x8xf32> to vector<8x8xbf16>
    %262 = arith.truncf %259 : vector<8x8xf32> to vector<8x8xbf16>
    %cst_45 = arith.constant dense<0.000000e+00> : vector<8x8xf32>
    %263 = tpu.matmul %261, %262, %cst_45 {dimension_numbers = #tpu.dot_dimension_numbers<[1], [1], [0], [0], [0, 0, 1, 0], [], []>} : vector<8x8xbf16>, vector<8x8xbf16>, vector<8x8xf32> -> vector<8x8xf32>
    %cst_46 = arith.constant 0.353553385 : f32
    %264 = vector.broadcast %cst_46 : f32 to vector<8x8xf32>
    %265 = arith.mulf %263, %264 : vector<8x8xf32>
    %266 = arith.addf %265, %199 : vector<8x8xf32>
    %cst_47 = arith.constant dense<0xFF800000> : vector<8xf32>
    %267 = vector.multi_reduction <maximumf>, %266, %cst_47 [1] : vector<8x8xf32> to vector<8xf32>
    %268 = vector.shape_cast %267 : vector<8xf32> to vector<8x1xf32>
    %269 = vector.broadcast %268 : vector<8x1xf32> to vector<8x8xf32>
    %270 = arith.subf %266, %269 : vector<8x8xf32>
    %271 = math.exp %270 : vector<8x8xf32>
    %cst_48 = arith.constant dense<0.000000e+00> : vector<8xf32>
    %272 = vector.multi_reduction <add>, %271, %cst_48 [1] : vector<8x8xf32> to vector<8xf32>
    %273 = vector.shape_cast %272 : vector<8xf32> to vector<8x1xf32>
    %274 = tpu.reciprocal %273 {approx = true} : vector<8x1xf32> -> vector<8x1xf32>
    %275 = arith.truncf %271 : vector<8x8xf32> to vector<8x8xbf16>
    %276 = arith.truncf %260 : vector<8x8xf32> to vector<8x8xbf16>
    %cst_49 = arith.constant dense<0.000000e+00> : vector<8x8xf32>
    %277 = tpu.matmul %275, %276, %cst_49 {dimension_numbers = #tpu.dot_dimension_numbers<[1], [0], [0], [1], [0, 0, 1, 1], [], []>} : vector<8x8xbf16>, vector<8x8xbf16>, vector<8x8xf32> -> vector<8x8xf32>
    %278 = vector.broadcast %274 : vector<8x1xf32> to vector<8x8xf32>
    %279 = arith.mulf %277, %278 : vector<8x8xf32>
    %280 = vector.extract_strided_slice %19 {offsets = [8, 16], sizes = [8, 8], strides = [1, 1]} : vector<16x96xf32> to vector<8x8xf32>
    %281 = vector.extract_strided_slice %280 {offsets = [0, 0], sizes = [8, 4], strides = [1, 1]} : vector<8x8xf32> to vector<8x4xf32>
    %282 = vector.extract_strided_slice %280 {offsets = [0, 4], sizes = [8, 4], strides = [1, 1]} : vector<8x8xf32> to vector<8x4xf32>
    %283 = arith.mulf %281, %1 : vector<8x4xf32>
    %284 = arith.mulf %282, %2 : vector<8x4xf32>
    %285 = arith.subf %283, %284 : vector<8x4xf32>
    %286 = arith.mulf %282, %1 : vector<8x4xf32>
    %287 = arith.mulf %281, %2 : vector<8x4xf32>
    %288 = arith.addf %286, %287 : vector<8x4xf32>
    %289 = tpu.concatenate %285, %288 in 1 : vector<8x4xf32>, vector<8x4xf32> -> vector<8x8xf32>
    %290 = vector.extract_strided_slice %19 {offsets = [8, 48], sizes = [8, 8], strides = [1, 1]} : vector<16x96xf32> to vector<8x8xf32>
    %291 = vector.extract_strided_slice %290 {offsets = [0, 0], sizes = [8, 4], strides = [1, 1]} : vector<8x8xf32> to vector<8x4xf32>
    %292 = vector.extract_strided_slice %290 {offsets = [0, 4], sizes = [8, 4], strides = [1, 1]} : vector<8x8xf32> to vector<8x4xf32>
    %293 = arith.mulf %291, %1 : vector<8x4xf32>
    %294 = arith.mulf %292, %2 : vector<8x4xf32>
    %295 = arith.subf %293, %294 : vector<8x4xf32>
    %296 = arith.mulf %292, %1 : vector<8x4xf32>
    %297 = arith.mulf %291, %2 : vector<8x4xf32>
    %298 = arith.addf %296, %297 : vector<8x4xf32>
    %299 = tpu.concatenate %295, %298 in 1 : vector<8x4xf32>, vector<8x4xf32> -> vector<8x8xf32>
    %300 = vector.extract_strided_slice %19 {offsets = [8, 80], sizes = [8, 8], strides = [1, 1]} : vector<16x96xf32> to vector<8x8xf32>
    %301 = arith.truncf %289 : vector<8x8xf32> to vector<8x8xbf16>
    %302 = arith.truncf %299 : vector<8x8xf32> to vector<8x8xbf16>
    %cst_50 = arith.constant dense<0.000000e+00> : vector<8x8xf32>
    %303 = tpu.matmul %301, %302, %cst_50 {dimension_numbers = #tpu.dot_dimension_numbers<[1], [1], [0], [0], [0, 0, 1, 0], [], []>} : vector<8x8xbf16>, vector<8x8xbf16>, vector<8x8xf32> -> vector<8x8xf32>
    %cst_51 = arith.constant 0.353553385 : f32
    %304 = vector.broadcast %cst_51 : f32 to vector<8x8xf32>
    %305 = arith.mulf %303, %304 : vector<8x8xf32>
    %306 = arith.addf %305, %199 : vector<8x8xf32>
    %cst_52 = arith.constant dense<0xFF800000> : vector<8xf32>
    %307 = vector.multi_reduction <maximumf>, %306, %cst_52 [1] : vector<8x8xf32> to vector<8xf32>
    %308 = vector.shape_cast %307 : vector<8xf32> to vector<8x1xf32>
    %309 = vector.broadcast %308 : vector<8x1xf32> to vector<8x8xf32>
    %310 = arith.subf %306, %309 : vector<8x8xf32>
    %311 = math.exp %310 : vector<8x8xf32>
    %cst_53 = arith.constant dense<0.000000e+00> : vector<8xf32>
    %312 = vector.multi_reduction <add>, %311, %cst_53 [1] : vector<8x8xf32> to vector<8xf32>
    %313 = vector.shape_cast %312 : vector<8xf32> to vector<8x1xf32>
    %314 = tpu.reciprocal %313 {approx = true} : vector<8x1xf32> -> vector<8x1xf32>
    %315 = arith.truncf %311 : vector<8x8xf32> to vector<8x8xbf16>
    %316 = arith.truncf %300 : vector<8x8xf32> to vector<8x8xbf16>
    %cst_54 = arith.constant dense<0.000000e+00> : vector<8x8xf32>
    %317 = tpu.matmul %315, %316, %cst_54 {dimension_numbers = #tpu.dot_dimension_numbers<[1], [0], [0], [1], [0, 0, 1, 1], [], []>} : vector<8x8xbf16>, vector<8x8xbf16>, vector<8x8xf32> -> vector<8x8xf32>
    %318 = vector.broadcast %314 : vector<8x1xf32> to vector<8x8xf32>
    %319 = arith.mulf %317, %318 : vector<8x8xf32>
    %320 = vector.extract_strided_slice %19 {offsets = [8, 24], sizes = [8, 8], strides = [1, 1]} : vector<16x96xf32> to vector<8x8xf32>
    %321 = vector.extract_strided_slice %320 {offsets = [0, 0], sizes = [8, 4], strides = [1, 1]} : vector<8x8xf32> to vector<8x4xf32>
    %322 = vector.extract_strided_slice %320 {offsets = [0, 4], sizes = [8, 4], strides = [1, 1]} : vector<8x8xf32> to vector<8x4xf32>
    %323 = arith.mulf %321, %1 : vector<8x4xf32>
    %324 = arith.mulf %322, %2 : vector<8x4xf32>
    %325 = arith.subf %323, %324 : vector<8x4xf32>
    %326 = arith.mulf %322, %1 : vector<8x4xf32>
    %327 = arith.mulf %321, %2 : vector<8x4xf32>
    %328 = arith.addf %326, %327 : vector<8x4xf32>
    %329 = tpu.concatenate %325, %328 in 1 : vector<8x4xf32>, vector<8x4xf32> -> vector<8x8xf32>
    %330 = vector.extract_strided_slice %19 {offsets = [8, 56], sizes = [8, 8], strides = [1, 1]} : vector<16x96xf32> to vector<8x8xf32>
    %331 = vector.extract_strided_slice %330 {offsets = [0, 0], sizes = [8, 4], strides = [1, 1]} : vector<8x8xf32> to vector<8x4xf32>
    %332 = vector.extract_strided_slice %330 {offsets = [0, 4], sizes = [8, 4], strides = [1, 1]} : vector<8x8xf32> to vector<8x4xf32>
    %333 = arith.mulf %331, %1 : vector<8x4xf32>
    %334 = arith.mulf %332, %2 : vector<8x4xf32>
    %335 = arith.subf %333, %334 : vector<8x4xf32>
    %336 = arith.mulf %332, %1 : vector<8x4xf32>
    %337 = arith.mulf %331, %2 : vector<8x4xf32>
    %338 = arith.addf %336, %337 : vector<8x4xf32>
    %339 = tpu.concatenate %335, %338 in 1 : vector<8x4xf32>, vector<8x4xf32> -> vector<8x8xf32>
    %340 = vector.extract_strided_slice %19 {offsets = [8, 88], sizes = [8, 8], strides = [1, 1]} : vector<16x96xf32> to vector<8x8xf32>
    %341 = arith.truncf %329 : vector<8x8xf32> to vector<8x8xbf16>
    %342 = arith.truncf %339 : vector<8x8xf32> to vector<8x8xbf16>
    %cst_55 = arith.constant dense<0.000000e+00> : vector<8x8xf32>
    %343 = tpu.matmul %341, %342, %cst_55 {dimension_numbers = #tpu.dot_dimension_numbers<[1], [1], [0], [0], [0, 0, 1, 0], [], []>} : vector<8x8xbf16>, vector<8x8xbf16>, vector<8x8xf32> -> vector<8x8xf32>
    %cst_56 = arith.constant 0.353553385 : f32
    %344 = vector.broadcast %cst_56 : f32 to vector<8x8xf32>
    %345 = arith.mulf %343, %344 : vector<8x8xf32>
    %346 = arith.addf %345, %199 : vector<8x8xf32>
    %cst_57 = arith.constant dense<0xFF800000> : vector<8xf32>
    %347 = vector.multi_reduction <maximumf>, %346, %cst_57 [1] : vector<8x8xf32> to vector<8xf32>
    %348 = vector.shape_cast %347 : vector<8xf32> to vector<8x1xf32>
    %349 = vector.broadcast %348 : vector<8x1xf32> to vector<8x8xf32>
    %350 = arith.subf %346, %349 : vector<8x8xf32>
    %351 = math.exp %350 : vector<8x8xf32>
    %cst_58 = arith.constant dense<0.000000e+00> : vector<8xf32>
    %352 = vector.multi_reduction <add>, %351, %cst_58 [1] : vector<8x8xf32> to vector<8xf32>
    %353 = vector.shape_cast %352 : vector<8xf32> to vector<8x1xf32>
    %354 = tpu.reciprocal %353 {approx = true} : vector<8x1xf32> -> vector<8x1xf32>
    %355 = arith.truncf %351 : vector<8x8xf32> to vector<8x8xbf16>
    %356 = arith.truncf %340 : vector<8x8xf32> to vector<8x8xbf16>
    %cst_59 = arith.constant dense<0.000000e+00> : vector<8x8xf32>
    %357 = tpu.matmul %355, %356, %cst_59 {dimension_numbers = #tpu.dot_dimension_numbers<[1], [0], [0], [1], [0, 0, 1, 1], [], []>} : vector<8x8xbf16>, vector<8x8xbf16>, vector<8x8xf32> -> vector<8x8xf32>
    %358 = vector.broadcast %354 : vector<8x1xf32> to vector<8x8xf32>
    %359 = arith.mulf %357, %358 : vector<8x8xf32>
    %360 = tpu.concatenate %239, %279, %319, %359 in 1 : vector<8x8xf32>, vector<8x8xf32>, vector<8x8xf32>, vector<8x8xf32> -> vector<8x32xf32>
    %361 = tpu.concatenate %191, %360 in 0 : vector<8x32xf32>, vector<8x32xf32> -> vector<16x32xf32>
    %c0_60 = arith.constant 0 : index
    %c0_61 = arith.constant 0 : index
    %362 = vector.load %arg7[%c0_60, %c0_61] : memref<32x32xbf16, #tpu.memory_space<vmem>>, vector<32x32xbf16>
    %363 = arith.truncf %361 : vector<16x32xf32> to vector<16x32xbf16>
    %cst_62 = arith.constant dense<0.000000e+00> : vector<16x32xf32>
    %364 = tpu.matmul %363, %362, %cst_62 {dimension_numbers = #tpu.dot_dimension_numbers<[1], [0], [0], [1], [0, 0, 1, 1], [], []>} : vector<16x32xbf16>, vector<32x32xbf16>, vector<16x32xf32> -> vector<16x32xf32>
    %365 = arith.addf %0, %364 : vector<16x32xf32>
    %c0_63 = arith.constant 0 : index
    %c0_64 = arith.constant 0 : index
    %366 = vector.load %arg8[%c0_63, %c0_64] : memref<1x32xf32, #tpu.memory_space<vmem>>, vector<1x32xf32>
    %367 = arith.mulf %365, %365 : vector<16x32xf32>
    %cst_65 = arith.constant dense<0.000000e+00> : vector<16xf32>
    %368 = vector.multi_reduction <add>, %367, %cst_65 [1] : vector<16x32xf32> to vector<16xf32>
    %369 = vector.shape_cast %368 : vector<16xf32> to vector<16x1xf32>
    %cst_66 = arith.constant 3.200000e+01 : f32
    %370 = vector.broadcast %cst_66 : f32 to vector<16x1xf32>
    %371 = arith.divf %369, %370 : vector<16x1xf32>
    %cst_67 = arith.constant 9.99999997E-7 : f32
    %372 = vector.broadcast %cst_67 : f32 to vector<16x1xf32>
    %373 = arith.addf %371, %372 : vector<16x1xf32>
    %374 = math.rsqrt %373 : vector<16x1xf32>
    %375 = vector.broadcast %374 : vector<16x1xf32> to vector<16x32xf32>
    %376 = arith.mulf %365, %375 : vector<16x32xf32>
    %377 = vector.broadcast %366 : vector<1x32xf32> to vector<16x32xf32>
    %378 = arith.mulf %376, %377 : vector<16x32xf32>
    %c0_68 = arith.constant 0 : index
    %c0_69 = arith.constant 0 : index
    %379 = vector.load %arg9[%c0_68, %c0_69] : memref<32x128xbf16, #tpu.memory_space<vmem>>, vector<32x128xbf16>
    %380 = arith.truncf %378 : vector<16x32xf32> to vector<16x32xbf16>
    %cst_70 = arith.constant dense<0.000000e+00> : vector<16x128xf32>
    %381 = tpu.matmul %380, %379, %cst_70 {dimension_numbers = #tpu.dot_dimension_numbers<[1], [0], [0], [1], [0, 0, 1, 1], [], []>} : vector<16x32xbf16>, vector<32x128xbf16>, vector<16x128xf32> -> vector<16x128xf32>
    %382 = vector.extract_strided_slice %381 {offsets = [0, 0], sizes = [16, 64], strides = [1, 1]} : vector<16x128xf32> to vector<16x64xf32>
    %383 = vector.extract_strided_slice %381 {offsets = [0, 64], sizes = [16, 64], strides = [1, 1]} : vector<16x128xf32> to vector<16x64xf32>
    %384 = arith.negf %382 : vector<16x64xf32>
    %385 = math.exp %384 : vector<16x64xf32>
    %cst_71 = arith.constant 1.000000e+00 : f32
    %386 = vector.broadcast %cst_71 : f32 to vector<16x64xf32>
    %387 = arith.addf %386, %385 : vector<16x64xf32>
    %388 = arith.divf %386, %387 : vector<16x64xf32>
    %389 = arith.mulf %382, %388 : vector<16x64xf32>
    %390 = arith.mulf %389, %383 : vector<16x64xf32>
    %c0_72 = arith.constant 0 : index
    %c0_73 = arith.constant 0 : index
    %391 = vector.load %arg10[%c0_72, %c0_73] : memref<64x32xbf16, #tpu.memory_space<vmem>>, vector<64x32xbf16>
    %392 = arith.truncf %390 : vector<16x64xf32> to vector<16x64xbf16>
    %cst_74 = arith.constant dense<0.000000e+00> : vector<16x32xf32>
    %393 = tpu.matmul %392, %391, %cst_74 {dimension_numbers = #tpu.dot_dimension_numbers<[1], [0], [0], [1], [0, 0, 1, 1], [], []>} : vector<16x64xbf16>, vector<64x32xbf16>, vector<16x32xf32> -> vector<16x32xf32>
    %394 = arith.addf %365, %393 : vector<16x32xf32>
    %c0_75 = arith.constant 0 : index
    %c0_76 = arith.constant 0 : index
    %395 = vector.load %arg11[%c0_75, %c0_76] : memref<16x32xf32, #tpu.memory_space<vmem>>, vector<16x32xf32>
    tpu.vector_store %arg11[%c0_75, %c0_76], %394 {strides = array<i32>} : memref<16x32xf32, #tpu.memory_space<vmem>>, vector<16x32xf32>,
    return
  }
  func.func @transform_0(%arg0: i32) -> (i32, i32) {
    %c0_i32 = arith.constant 0 : i32
    %c0_i32_0 = arith.constant 0 : i32
    %c0_i32_1 = arith.constant 0 : i32
    return %c0_i32, %c0_i32_0 : i32, i32
  }
  func.func @transform_1(%arg0: i32) -> (i32, i32) {
    %c0_i32 = arith.constant 0 : i32
    %c0_i32_0 = arith.constant 0 : i32
    %c0_i32_1 = arith.constant 0 : i32
    return %c0_i32, %c0_i32_0 : i32, i32
  }
  func.func @transform_2(%arg0: i32) -> (i32, i32) {
    %c0_i32 = arith.constant 0 : i32
    %c0_i32_0 = arith.constant 0 : i32
    %c0_i32_1 = arith.constant 0 : i32
    return %c0_i32, %c0_i32_0 : i32, i32
  }
  func.func @transform_3(%arg0: i32) -> (i32, i32) {
    %c0_i32 = arith.constant 0 : i32
    %c0_i32_0 = arith.constant 0 : i32
    %c0_i32_1 = arith.constant 0 : i32
    return %c0_i32, %c0_i32_0 : i32, i32
  }
  func.func @transform_4(%arg0: i32) -> (i32, i32) {
    %c0_i32 = arith.constant 0 : i32
    %c0_i32_0 = arith.constant 0 : i32
    %c0_i32_1 = arith.constant 0 : i32
    return %c0_i32, %c0_i32_0 : i32, i32
  }
  func.func @transform_5(%arg0: i32) -> (i32, i32) {
    %c0_i32 = arith.constant 0 : i32
    %c0_i32_0 = arith.constant 0 : i32
    %c0_i32_1 = arith.constant 0 : i32
    return %c0_i32, %c0_i32_0 : i32, i32
  }
  func.func @transform_6(%arg0: i32) -> (i32, i32) {
    %c0_i32 = arith.constant 0 : i32
    %c0_i32_0 = arith.constant 0 : i32
    %c0_i32_1 = arith.constant 0 : i32
    return %c0_i32, %c0_i32_0 : i32, i32
  }
  func.func @transform_7(%arg0: i32) -> (i32, i32) {
    %c0_i32 = arith.constant 0 : i32
    %c0_i32_0 = arith.constant 0 : i32
    %c0_i32_1 = arith.constant 0 : i32
    return %c0_i32, %c0_i32_0 : i32, i32
  }
  func.func @transform_8(%arg0: i32) -> (i32, i32) {
    %c0_i32 = arith.constant 0 : i32
    %c0_i32_0 = arith.constant 0 : i32
    %c0_i32_1 = arith.constant 0 : i32
    return %c0_i32, %c0_i32_0 : i32, i32
  }
  func.func @transform_9(%arg0: i32) -> (i32, i32) {
    %c0_i32 = arith.constant 0 : i32
    %c0_i32_0 = arith.constant 0 : i32
    %c0_i32_1 = arith.constant 0 : i32
    return %c0_i32, %c0_i32_0 : i32, i32
  }
  func.func @transform_10(%arg0: i32) -> (i32, i32) {
    %c0_i32 = arith.constant 0 : i32
    %c0_i32_0 = arith.constant 0 : i32
    %c0_i32_1 = arith.constant 0 : i32
    return %c0_i32, %c0_i32_0 : i32, i32
  }
}

</mosaic_0001>

<bundles_post_ra>
// kernel: _lambda_.1
= control target key start
LH: loop header
LB: loop body
LE: loop exit
PB: predicated region body
PF: predicated region fallthrough
CT: control target
= control target key end

     0   :  { %vm45_vm0 = vcmask 261120   ;;  %s2814_s0 = inlined_call_operand.vmem [shape: f32[16,32], index: 0, kind: input, shape index: {}]   ;;  %s2815_s1 = inlined_call_operand.vmem [shape: f32[2,8], index: 1, kind: input, shape index: {}]   ;;  %s2816_s2 = inlined_call_operand.vmem [shape: f32[8,4], index: 2, kind: input, shape index: {}]   ;;  %s2817_s3 = inlined_call_operand.vmem [shape: f32[8,4], index: 3, kind: input, shape index: {}]   ;;  %s2818_s4 = inlined_call_operand.vmem [shape: f32[1,32], index: 4, kind: input, shape index: {}]   ;;  %s2819_s5 = inlined_call_operand.vmem [shape: bf16[32,96], index: 5, kind: input, shape index: {}]   ;;  %s2820_s6 = inlined_call_operand.vmem [shape: bf16[32,32], index: 6, kind: input, shape index: {}]   ;;  %s2821_s7 = inlined_call_operand.vmem [shape: f32[1,32], index: 7, kind: input, shape index: {}]   ;;  %s2822_s8 = inlined_call_operand.vmem [shape: bf16[32,128], index: 8, kind: input, shape index: {}]   ;;  %s2823_s9 = inlined_call_operand.vmem [shape: bf16[64,32], index: 9, kind: input, shape index: {}]   ;;  %s2824_s10 = inlined_call_operand.hbm [shape: f32[16,32], index: 10, kind: output, shape index: {}]  }
   0x1   :  { %v2284_v0 = vld [vmem:[%s2814_s0] sm:$0xff]  ;;  %v2289_v1 = vld [vmem:[%s2814_s0 + $0x8] sm:$0xff] }
   0x2   :  { %v43_v2 = vmul.f32 %v2284_v0, %v2284_v0  ;;  %v44_v3 = vmul.f32 %v2289_v1, %v2289_v1 }
   0x4   :  { %v46_v4 = vsel %vm45_vm0, %v43_v2, 0.0  ;;  %v49_v5 = vsel %vm45_vm0, %v44_v3, 0.0 }
   0x5   :  { %47 = vadd.xlane.f32.xlu0 %v46_v4 }
   0x6   :  { %15 = vsyncpa [#allocation3], 0  ;;  %v2112_v6 = vld [vmem:[%s2819_s5] sm:$0xff]   ;;  %v2196_v7 = vmov 0.0   ;;  %vm2197_vm1 = vmmov 0   ;;  %v2113_v8 = vld [vmem:[%s2819_s5 + $0x8] sm:$0xff]  }
   0x7   :  { %1865 = vmatprep.subr.bf16.mxu0 %v2196_v7  ;;  %1869 = vmatprep.mubr.msk.bf16.mxu0 %vm2197_vm1, %v2196_v7  ;;  %v2314_v9 = vld [vmem:[%s2817_s3] sm:$0xff]  ;;  %s2198_s23 = smov 36   ;;  %s2199_s24 = smov 32   ;;  %vm166_vm2 = vcmask 31744   ;;  %vm205_vm3 = vcmask 64512   ;;  %vm272_vm4 = vcmask 1043456  }
   0x8   :  { %1866 = vmatpush3.bf16.msra.mxu0 %v2112_v6  ;;  %1873 = vmatprep.subr.bf16.mxu1 %v2196_v7  ;;  %s2200_s5 = smov 44   ;;  %s2201_s25 = smov 40   ;;  %v2335_v10 = vld [vmem:[%s2816_s2] sm:$0xff]  ;;  %vm870_vm11 = vcmask 130048   ;;  %vm872_vm12 = vcmask 195584   ;;  %vm1720_vm13 = vcmask 523264  }
   0x9   :  { %50 = vadd.xlane.f32.xlu0 %v49_v5  ;;  %1867 = vmatprep.subr.bf16.mxu0 %v2196_v7  ;;  %s2202_s26 = smov 16   ;;  %s2203_s3 = smov 12   ;;  %v1785_v20 = vld [vmem:[%s2818_s4] ss:$0 sm:$0xff] }
   0xa   :  { %1875 = vmatprep.mubr.msk.bf16.mxu1 %vm2197_vm1, %v2196_v7  ;;  %172 = vrot.lane.b32.xlu1 %v2314_v9, %s2198_s23  ;;  %s2204_s27 = smov 56   ;;  %s2205_s28 = smov 8  }
   0xb   :  { %s2206_s29 = smov 24   ;;  %s2207_s12 = smov 52  }
   0xc   :  { %1868 = vmatpush3.bf16.msra.mxu0 %v2113_v8  ;;  %s2208_s13 = smov 48   ;;  %s2209_s14 = smov 20  }
   0xd   :  { %1879 = vmatprep.subr.bf16.mxu0 %v2196_v7  ;;  %s2210_s2 = smov 60   ;;  %s2211_s15 = smov 28  }
   0xe   :  { %185 = vrot.lane.b32.xlu1 %v2314_v9, %s2199_s24  ;;  %s2212_s16 = smov 4   ;;  %s2213_s4 = smov 124  }
   0xf   :  { %s2214_s19 = smov 96   ;;  %s2215_s20 = smov 88  }
  0x10   :  { %s2216_s21 = smov 120   ;;  %s2217_s22 = smov 80  }
  0x12   :  { %369 = vrot.lane.b32.xlu1 %v2314_v9, %s2201_s25 }
  0x16   :  { %321 = vrot.lane.b32.xlu1 %v2314_v9, %s2203_s3 }
  0x1a   :  { %334 = vrot.lane.b32.xlu1 %v2314_v9, %s2205_s28 }
  0x1e   :  { %536 = vrot.lane.b32.xlu1 %v2314_v9, %s2207_s12 }
  0x1f   :  { %356 = vrot.lane.b32.xlu0 %v2314_v9, %s2200_s5 }
  0x22   :  { %549 = vrot.lane.b32.xlu1 %v2314_v9, %s2208_s13 }
  0x23   :  { %514 = vrot.lane.b32.xlu0 %v2314_v9, %s2202_s26 }
  0x26   :  { %501 = vrot.lane.b32.xlu1 %v2314_v9, %s2209_s14 }
  0x27   :  { %729 = vrot.lane.b32.xlu0 %v2314_v9, %s2204_s27 }
  0x2a   :  { %716 = vrot.lane.b32.xlu1 %v2314_v9, %s2210_s2 }
  0x2b   :  { %694 = vrot.lane.b32.xlu0 %v2314_v9, %s2206_s29 }
  0x2e   :  { %681 = vrot.lane.b32.xlu1 %v2314_v9, %s2211_s15 }
  0x2f   :  { %181 = vrot.lane.b32.xlu0 %v2335_v10, %s2198_s23  ;;  %s2218_s23 = smov 112  }
  0x32   :  { %168 = vrot.lane.b32.xlu1 %v2335_v10, %s2199_s24  ;;  %s2219_s24 = smov 72  }
  0x33   :  { %352 = vrot.lane.b32.xlu0 %v2335_v10, %s2201_s25 }
  0x36   :  { %146 = vrot.lane.b32.xlu1 %v2314_v9, %s2212_s16 }
  0x37   :  { %317 = vrot.lane.b32.xlu0 %v2335_v10, %s2205_s28 }
  0x3a   :  { %365 = vrot.lane.b32.xlu1 %v2335_v10, %s2200_s5  ;;  %s2220_s5 = smov 104  }
  0x3b   :  { %532 = vrot.lane.b32.xlu0 %v2335_v10, %s2208_s13 }
  0x3e   :  { %330 = vrot.lane.b32.xlu1 %v2335_v10, %s2203_s3  ;;  %s2221_s3 = smov 64  }
  0x3f   :  { %497 = vrot.lane.b32.xlu0 %v2335_v10, %s2202_s26 }
  0x42   :  { %545 = vrot.lane.b32.xlu1 %v2335_v10, %s2207_s12 }
  0x43   :  { %712 = vrot.lane.b32.xlu0 %v2335_v10, %s2204_s27 }
  0x46   :  { %510 = vrot.lane.b32.xlu1 %v2335_v10, %s2209_s14 }
  0x4a   :  { %725 = vrot.lane.b32.xlu1 %v2335_v10, %s2210_s2 }
  0x7c   :  { %v173_v25 = vpop.permute.xlu1 %172 }
  0x80   :  { %v186_v26 = vpop.permute.xlu1 %185 }
  0x84   :  { %v370_v27 = vpop.permute.xlu1 %369 }
  0x88   :  { %v322_v28 = vpop.permute.xlu1 %321 }
  0x8c   :  { %v335_v29 = vpop.permute.xlu1 %334 }
  0x90   :  { %v537_v36 = vpop.permute.xlu1 %536 }
  0x92   :  { %v48_v11 = vpop.xlane.xlu0 %47 }
  0x93   :  { %v53_v12 = vmul.f32 0.03125, %v48_v11 }
  0x94   :  { %v550_v40 = vpop.permute.xlu1 %549 }
  0x95   :  { %v55_v13 = vadd.f32 1e-06, %v53_v12 }
  0x96   :  { %v51_v14 = vpop.xlane.xlu0 %50 }
  0x97   :  { %2122 = vrsqrt.f32 %v55_v13  ;;  %v54_v15 = vmul.f32 0.03125, %v51_v14 }
  0x98   :  { %v502_v43 = vpop.permute.xlu1 %501 }
  0x99   :  { %v56_v16 = vadd.f32 1e-06, %v54_v15 }
  0x9a   :  { %v357_v37 = vpop.permute.xlu0 %356 }
  0x9b   :  { %2124 = vrsqrt.f32 %v56_v16 }
  0x9c   :  { %v717_v49 = vpop.permute.xlu1 %716 }
  0x9e   :  { %v515_v44 = vpop.permute.xlu0 %514 }
  0xa0   :  { %v682_v53 = vpop.permute.xlu1 %681 }
  0xa1   :  { %v2123_v17 = vpop.eup %2122 }
  0xa2   :  { %v59_v18 = vmul.f32 %v2123_v17, %v2284_v0  ;;  %v730_v50 = vpop.permute.xlu0 %729 }
  0xa4   :  { %v67_v22 = vmul.f32 %v1785_v20, %v59_v18  ;;  %v2442_v11 = vpop.permute.xlu1 %168 }
  0xa5   :  { %v2125_v19 = vpop.eup %2124 }
  0xa6   :  { %v60_v21 = vmul.f32 %v2125_v19, %v2289_v1  ;;  %v695_v54 = vpop.permute.xlu0 %694 }
  0xa8   :  { %v68_v23 = vmul.f32 %v1785_v20, %v60_v21  ;;  %v2444_v12 = vpop.permute.xlu1 %146 }
  0xaa   :  { %v73_v24 = vpack.c.bf16 %v68_v23, %v67_v22  ;;  %v2446_v13 = vpop.permute.xlu0 %181 }
  0xac   :  { %1870 = vmatmul.mubr.msk.bf16.vlgmr.msra.gmra.mrb[0].mxu0 %vm45_vm0, %v73_v24  ;;  %v2448_v14 = vpop.permute.xlu1 %365 }
  0xad   :  { %1881 = vmatprep.mubr.msk.bf16.mxu0 %vm2197_vm1, %v2196_v7 }
  0xae   :  { %v2450_v15 = vpop.permute.xlu0 %352 }
  0xb0   :  { %v2452_v16 = vpop.permute.xlu1 %330 }
  0xb2   :  { %v2454_v17 = vpop.permute.xlu0 %317 }
  0xb4   :  { %v2456_v18 = vpop.permute.xlu1 %545 }
  0xb6   :  { %v2458_v19 = vpop.permute.xlu0 %532 }
  0xb8   :  { %v2460_v20 = vpop.permute.xlu1 %510 }
  0xba   :  { %v2462_v21 = vpop.permute.xlu0 %497 }
  0xbc   :  { %v2464_v22 = vpop.permute.xlu1 %725 }
  0xbe   :  { %v2466_v23 = vpop.permute.xlu0 %712 }
 0x17f   :  { %v2373_v30 = vpop.f32.mrb[0].mxu0 }
 0x180   :  { %v1871_v31 = vpop.f32.mrb[1].mxu0  ;;  %v188_v32 = vmul.f32 %v186_v26, %v2373_v30  ;;  %v175_v33 = vmul.f32 %v173_v25, %v2373_v30  ;;  %v372_v38 = vmul.f32 %v370_v27, %v2373_v30  ;;  %v359_v39 = vmul.f32 %v357_v37, %v2373_v30 }
 0x181   :  { %v2377_v34 = vpop.f32.mrb[2].mxu0  ;;  %v337_v41 = vmul.f32 %v335_v29, %v2373_v30  ;;  %v324_v42 = vmul.f32 %v322_v28, %v2373_v30  ;;  %v552_v45 = vmul.f32 %v550_v40, %v2373_v30  ;;  %v539_v46 = vmul.f32 %v537_v36, %v2373_v30 }
 0x182   :  { %190 = vrot.lane.b32.xlu0 %v188_v32, %s2212_s16  ;;  %177 = vrot.lane.b32.xlu1 %v175_v33, %s2213_s4  ;;  %v1872_v35 = vpop.f32.mrb[3].mxu0  ;;  %v504_v47 = vmul.f32 %v502_v43, %v2373_v30  ;;  %v517_v48 = vmul.f32 %v515_v44, %v2373_v30  ;;  %v719_v51 = vmul.f32 %v717_v49, %v2373_v30 }
 0x183   :  { %v732_v52 = vmul.f32 %v730_v50, %v2373_v30  ;;  %v684_v55 = vmul.f32 %v682_v53, %v2373_v30  ;;  %v697_v56 = vmul.f32 %v695_v54, %v2373_v30  ;;  %v897_v57 = vmul.f32 %v173_v25, %v2377_v34 }
 0x184   :  { %v904_v58 = vmul.f32 %v186_v26, %v2377_v34  ;;  %v1055_v59 = vmul.f32 %v357_v37, %v2377_v34  ;;  %v1062_v60 = vmul.f32 %v370_v27, %v2377_v34  ;;  %v1032_v61 = vmul.f32 %v322_v28, %v2377_v34 }
 0x185   :  { %v1039_v62 = vmul.f32 %v335_v29, %v2377_v34  ;;  %v1211_v63 = vmul.f32 %v537_v36, %v2377_v34  ;;  %v1218_v0 = vmul.f32 %v550_v40, %v2377_v34  ;;  %v1188_v1 = vmul.f32 %v502_v43, %v2377_v34 }
 0x186   :  { %677 = vrot.lane.b32.xlu0 %v2335_v10, %s2206_s29  ;;  %690 = vrot.lane.b32.xlu1 %v2335_v10, %s2211_s15  ;;  %v1195_v2 = vmul.f32 %v515_v44, %v2377_v34  ;;  %v1367_v3 = vmul.f32 %v717_v49, %v2377_v34  ;;  %v1374_v4 = vmul.f32 %v730_v50, %v2377_v34 }
 0x187   :  { %v1344_v5 = vmul.f32 %v682_v53, %v2377_v34  ;;  %v1351_v6 = vmul.f32 %v695_v54, %v2377_v34  ;;  %v160_v8 = vmul.f32 %v2373_v30, %v2314_v9  ;;  %v171_v24 = vmul.f32 %v2442_v11, %v2373_v30 }
 0x188   :  { %v184_v25 = vmul.f32 %v2446_v13, %v2373_v30  ;;  %v368_v35 = vmul.f32 %v2448_v14, %v2373_v30  ;;  %v355_v36 = vmul.f32 %v2450_v15, %v2373_v30  ;;  %v149_v37 = vmul.f32 %v2444_v12, %v2373_v30 }
 0x189   :  { %v333_v43 = vmul.f32 %v2452_v16, %v2373_v30  ;;  %v320_v44 = vmul.f32 %v2454_v17, %v2373_v30  ;;  %v548_v50 = vmul.f32 %v2456_v18, %v2373_v30 }
 0x18a   :  { %374 = vrot.lane.b32.xlu1 %v372_v38, %s2212_s16  ;;  %361 = vrot.lane.b32.xlu0 %v359_v39, %s2213_s4 }
 0x18e   :  { %339 = vrot.lane.b32.xlu1 %v337_v41, %s2212_s16  ;;  %326 = vrot.lane.b32.xlu0 %v324_v42, %s2213_s4 }
 0x192   :  { %554 = vrot.lane.b32.xlu1 %v552_v45, %s2212_s16  ;;  %541 = vrot.lane.b32.xlu0 %v539_v46, %s2213_s4 }
 0x196   :  { %506 = vrot.lane.b32.xlu0 %v504_v47, %s2213_s4  ;;  %519 = vrot.lane.b32.xlu1 %v517_v48, %s2212_s16 }
 0x19a   :  { %721 = vrot.lane.b32.xlu0 %v719_v51, %s2213_s4  ;;  %734 = vrot.lane.b32.xlu1 %v732_v52, %s2212_s16  ;;  %v535_v51 = vmul.f32 %v2458_v19, %v2373_v30 }
 0x19e   :  { %686 = vrot.lane.b32.xlu0 %v684_v55, %s2213_s4  ;;  %699 = vrot.lane.b32.xlu1 %v697_v56, %s2212_s16 }
 0x1a2   :  { %899 = vrot.lane.b32.xlu0 %v897_v57, %s2213_s4  ;;  %906 = vrot.lane.b32.xlu1 %v904_v58, %s2212_s16  ;;  %v513_v57 = vmul.f32 %v2460_v20, %v2373_v30  ;;  %v500_v58 = vmul.f32 %v2462_v21, %v2373_v30 }
 0x1a6   :  { %1057 = vrot.lane.b32.xlu0 %v1055_v59, %s2213_s4  ;;  %1064 = vrot.lane.b32.xlu1 %v1062_v60, %s2212_s16 }
 0x1aa   :  { %1034 = vrot.lane.b32.xlu0 %v1032_v61, %s2213_s4  ;;  %1041 = vrot.lane.b32.xlu1 %v1039_v62, %s2212_s16 }
 0x1ae   :  { %1213 = vrot.lane.b32.xlu0 %v1211_v63, %s2213_s4  ;;  %1220 = vrot.lane.b32.xlu1 %v1218_v0, %s2212_s16  ;;  %v715_v63 = vmul.f32 %v2466_v23, %v2373_v30 }
 0x1b2   :  { %1190 = vrot.lane.b32.xlu0 %v1188_v1, %s2213_s4  ;;  %1197 = vrot.lane.b32.xlu1 %v1195_v2, %s2212_s16  ;;  %v728_v1 = vmul.f32 %v2464_v22, %v2373_v30 }
 0x1b6   :  { %1369 = vrot.lane.b32.xlu0 %v1367_v3, %s2213_s4  ;;  %1376 = vrot.lane.b32.xlu1 %v1374_v4, %s2212_s16 }
 0x1ba   :  { %1346 = vrot.lane.b32.xlu0 %v1344_v5, %s2213_s4  ;;  %156 = vrot.lane.b32.xlu1 %v2335_v10, %s2212_s16 }
 0x1be   :  { %1353 = vrot.lane.b32.xlu1 %v1351_v6, %s2212_s16 }
 0x1c2   :  { %162 = vrot.lane.b32.xlu1 %v160_v8, %s2212_s16 }
 0x1f4   :  { %v178_v26 = vpop.permute.xlu1 %177  ;;  %v191_v27 = vpop.permute.xlu0 %190 }
 0x1f5   :  { %v180_v28 = vsub.f32 %v171_v24, %v178_v26  ;;  %v193_v29 = vadd.f32 %v191_v27, %v184_v25 }
 0x1f7   :  { %v2027_v31 = vpack.i.bf16 %v193_v29, %v180_v28 }
 0x1f8   :  { %v2472_v32 = vpop.permute.xlu1 %690  ;;  %v2474_v33 = vpop.permute.xlu0 %677 }
 0x1f9   :  { %2028 = vrot.lane.b32.xlu0 %v2027_v31, %s2214_s19  ;;  %v693_v6 = vmul.f32 %v2472_v32, %v2373_v30  ;;  %v680_v8 = vmul.f32 %v2474_v33, %v2373_v30  ;;  %v903_v31 = vmul.f32 %v2446_v13, %v2377_v34  ;;  %v882_v13 = vmul.f32 %v2444_v12, %v2377_v34 }
 0x1fc   :  { %v375_v38 = vpop.permute.xlu1 %374  ;;  %v362_v39 = vpop.permute.xlu0 %361 }
 0x1fd   :  { %v377_v40 = vadd.f32 %v375_v38, %v368_v35  ;;  %v364_v41 = vsub.f32 %v355_v36, %v362_v39  ;;  %151 = vrot.lane.b32.xlu0 %v149_v37, %s2213_s4  ;;  %v896_v35 = vmul.f32 %v2442_v11, %v2377_v34 }
 0x1ff   :  { %v2032_v42 = vpack.i.bf16 %v377_v40, %v364_v41  ;;  %v1061_v41 = vmul.f32 %v2448_v14, %v2377_v34  ;;  %v1031_v14 = vmul.f32 %v2454_v17, %v2377_v34 }
 0x200   :  { %v340_v45 = vpop.permute.xlu1 %339  ;;  %v327_v46 = vpop.permute.xlu0 %326 }
 0x201   :  { %v342_v47 = vadd.f32 %v340_v45, %v333_v43  ;;  %v329_v48 = vsub.f32 %v320_v44, %v327_v46  ;;  %2033 = vrot.lane.b32.xlu0 %v2032_v42, %s2215_s20  ;;  %v1054_v42 = vmul.f32 %v2450_v15, %v2377_v34  ;;  %v889_v15 = vmul.f32 %v2377_v34, %v2314_v9 }
 0x203   :  { %v2037_v49 = vpack.i.bf16 %v342_v47, %v329_v48  ;;  %v1038_v47 = vmul.f32 %v2452_v16, %v2377_v34  ;;  %v1210_v16 = vmul.f32 %v2458_v19, %v2377_v34 }
 0x204   :  { %v555_v52 = vpop.permute.xlu1 %554  ;;  %v542_v53 = vpop.permute.xlu0 %541 }
 0x205   :  { %v557_v54 = vadd.f32 %v555_v52, %v548_v50  ;;  %v544_v55 = vsub.f32 %v535_v51, %v542_v53  ;;  %2038 = vrot.lane.b32.xlu1 %v2037_v49, %s2216_s21  ;;  %v1217_v52 = vmul.f32 %v2456_v18, %v2377_v34 }
 0x207   :  { %v2042_v56 = vpack.i.bf16 %v557_v54, %v544_v55 }
 0x208   :  { %v520_v59 = vpop.permute.xlu1 %519  ;;  %v507_v60 = vpop.permute.xlu0 %506 }
 0x209   :  { %v522_v61 = vadd.f32 %v520_v59, %v513_v57  ;;  %v509_v62 = vsub.f32 %v500_v58, %v507_v60  ;;  %2043 = vrot.lane.b32.xlu0 %v2042_v56, %s2217_s22  ;;  %v1194_v56 = vmul.f32 %v2460_v20, %v2377_v34  ;;  %v1187_v57 = vmul.f32 %v2462_v21, %v2377_v34 }
 0x20b   :  { %v2047_v0 = vpack.i.bf16 %v522_v61, %v509_v62  ;;  %v1373_v61 = vmul.f32 %v2464_v22, %v2377_v34  ;;  %v1366_v62 = vmul.f32 %v2466_v23, %v2377_v34  ;;  %v1350_v22 = vmul.f32 %v2472_v32, %v2377_v34 }
 0x20c   :  { %v735_v2 = vpop.permute.xlu1 %734  ;;  %v722_v3 = vpop.permute.xlu0 %721  ;;  %v1343_v23 = vmul.f32 %v2474_v33, %v2377_v34 }
 0x20d   :  { %v737_v4 = vadd.f32 %v735_v2, %v728_v1  ;;  %v724_v5 = vsub.f32 %v715_v63, %v722_v3  ;;  %2048 = vrot.lane.b32.xlu1 %v2047_v0, %s2218_s23 }
 0x20f   :  { %v2052_v24 = vpack.i.bf16 %v737_v4, %v724_v5 }
 0x210   :  { %v700_v25 = vpop.permute.xlu1 %699  ;;  %v687_v26 = vpop.permute.xlu0 %686 }
 0x211   :  { %v702_v27 = vadd.f32 %v700_v25, %v693_v6  ;;  %v689_v28 = vsub.f32 %v680_v8, %v687_v26  ;;  %2053 = vrot.lane.b32.xlu0 %v2052_v24, %s2219_s24  ;;  %v2556_v6 = vpack.c.bf16 %v2373_v30, %v2373_v30 }
 0x213   :  { %v2057_v29 = vpack.i.bf16 %v702_v27, %v689_v28 }
 0x214   :  { %v907_v36 = vpop.permute.xlu1 %906  ;;  %v900_v37 = vpop.permute.xlu0 %899 }
 0x215   :  { %v909_v38 = vadd.f32 %v907_v36, %v903_v31  ;;  %v902_v39 = vsub.f32 %v896_v35, %v900_v37  ;;  %2058 = vrot.lane.b32.xlu1 %v2057_v29, %s2220_s5  ;;  %v144_v29 = vmul.f32 %v2373_v30, %v2335_v10 }
 0x217   :  { %v2062_v40 = vpack.i.bf16 %v909_v38, %v902_v39 }
 0x218   :  { %v1065_v43 = vpop.permute.xlu1 %1064  ;;  %v1058_v44 = vpop.permute.xlu0 %1057 }
 0x219   :  { %v1067_v11 = vadd.f32 %v1065_v43, %v1061_v41  ;;  %v1060_v45 = vsub.f32 %v1054_v42, %v1058_v44  ;;  %884 = vrot.lane.b32.xlu1 %v882_v13, %s2213_s4  ;;  %2063 = vrot.lane.b32.xlu0 %v2062_v40, %s2214_s19 }
 0x21b   :  { %v2067_v46 = vpack.i.bf16 %v1067_v11, %v1060_v45 }
 0x21c   :  { %v1042_v48 = vpop.permute.xlu1 %1041  ;;  %v1035_v12 = vpop.permute.xlu0 %1034 }
 0x21d   :  { %v1044_v49 = vadd.f32 %v1042_v48, %v1038_v47  ;;  %v1037_v50 = vsub.f32 %v1031_v14, %v1035_v12  ;;  %891 = vrot.lane.b32.xlu0 %v889_v15, %s2212_s16  ;;  %2068 = vrot.lane.b32.xlu1 %v2067_v46, %s2215_s20 }
 0x21f   :  { %v2072_v51 = vpack.i.bf16 %v1044_v49, %v1037_v50 }
 0x220   :  { %v1221_v53 = vpop.permute.xlu1 %1220  ;;  %v1214_v17 = vpop.permute.xlu0 %1213 }
 0x221   :  { %v1223_v54 = vadd.f32 %v1221_v53, %v1217_v52  ;;  %v1216_v55 = vsub.f32 %v1210_v16, %v1214_v17  ;;  %2073 = vrot.lane.b32.xlu0 %v2072_v51, %s2216_s21 }
 0x223   :  { %v2077_v9 = vpack.i.bf16 %v1223_v54, %v1216_v55 }
 0x224   :  { %v1198_v58 = vpop.permute.xlu1 %1197  ;;  %v1191_v59 = vpop.permute.xlu0 %1190 }
 0x225   :  { %v1200_v60 = vadd.f32 %v1198_v58, %v1194_v56  ;;  %v1193_v18 = vsub.f32 %v1187_v57, %v1191_v59  ;;  %2078 = vrot.lane.b32.xlu1 %v2077_v9, %s2217_s22 }
 0x227   :  { %v2082_v19 = vpack.i.bf16 %v1200_v60, %v1193_v18 }
 0x228   :  { %v1377_v63 = vpop.permute.xlu1 %1376  ;;  %v1370_v0 = vpop.permute.xlu0 %1369 }
 0x229   :  { %v1379_v1 = vadd.f32 %v1377_v63, %v1373_v61  ;;  %v1372_v20 = vsub.f32 %v1366_v62, %v1370_v0  ;;  %2083 = vrot.lane.b32.xlu0 %v2082_v19, %s2218_s23 }
 0x22b   :  { %v2087_v21 = vpack.i.bf16 %v1379_v1, %v1372_v20 }
 0x22c   :  { %v157_v2 = vpop.permute.xlu1 %156  ;;  %v1347_v5 = vpop.permute.xlu0 %1346 }
 0x22d   :  { %v159_v3 = vmul.f32 %v157_v2, %v2373_v30  ;;  %v2547_v4 = vmul.f32 %v157_v2, %v2377_v34  ;;  %2088 = vrot.lane.b32.xlu1 %v2087_v21, %s2219_s24  ;;  %v1349_v24 = vsub.f32 %v1343_v23, %v1347_v5  ;;  %v881_v21 = vmul.f32 %v2377_v34, %v2335_v10 }
 0x230   :  { %v1354_v8 = vpop.permute.xlu1 %1353 }
 0x231   :  { %v1356_v25 = vadd.f32 %v1354_v8, %v1350_v22  ;;  %448 = vrot.lane.b32.xlu1 %v2556_v6, %s2204_s27 }
 0x233   :  { %v2092_v26 = vpack.i.bf16 %v1356_v25, %v1349_v24 }
 0x234   :  { %v163_v28 = vpop.permute.xlu1 %162 }
 0x235   :  { %2093 = vrot.lane.b32.xlu0 %v2092_v26, %s2220_s5  ;;  %v165_v37 = vadd.f32 %v163_v28, %v159_v3 }
 0x239   :  { %267 = vrot.lane.b32.xlu0 %v2556_v6, %s2221_s3 }
 0x26b   :  { %v2029_v32 = vpop.permute.xlu0 %2028 }
 0x26c   :  { %v2031_v33 = vunpack.i.h.bf16 %v2029_v32  ;;  %v2030_v27 = vunpack.i.l.bf16 %v2029_v32 }
 0x26e   :  { %v202_v31 = vsel %vm166_vm2, %v2030_v27, %v2031_v33 }
 0x26f   :  { %v152_v35 = vpop.permute.xlu0 %151  ;;  %v204_v36 = vpack.c.bf16 %v202_v31, %v202_v31 }
 0x270   :  { %v154_v38 = vsub.f32 %v144_v29, %v152_v35 }
 0x271   :  { %v210_v39 = vsel %vm205_vm3, %v204_v36, 0 }
 0x272   :  { %v167_v40 = vsel %vm166_vm2, %v154_v38, %v165_v37  ;;  %1874 = vmatpush3.bf16.xpose.msra.mxu1 %v210_v39 }
 0x273   :  { %v2034_v41 = vpop.permute.xlu0 %2033  ;;  %1885 = vmatprep.subr.bf16.mxu1 %v2196_v7  ;;  %v203_v30 = vpack.c.bf16 %v167_v40, %v167_v40 }
 0x274   :  { %v2036_v42 = vunpack.i.h.bf16 %v2034_v41  ;;  %v2035_v13 = vunpack.i.l.bf16 %v2034_v41 }
 0x276   :  { %v386_v43 = vsel %vm166_vm2, %v2035_v13, %v2036_v42 }
 0x277   :  { %v2039_v44 = vpop.permute.xlu1 %2038  ;;  %v388_v11 = vpack.c.bf16 %v386_v43, %v386_v43 }
 0x278   :  { %v2041_v45 = vunpack.i.h.bf16 %v2039_v44  ;;  %v2040_v46 = vunpack.i.l.bf16 %v2039_v44 }
 0x279   :  { %1876 = vmatmul.mubr.msk.bf16.vlgmr.msra.gmra.mrb[0].mxu1 %vm205_vm3, %v203_v30  ;;  %v393_v47 = vsel %vm205_vm3, %v388_v11, 0 }
 0x27a   :  { %1886 = vmatpush3.bf16.xpose.msra.mxu1 %v393_v47  ;;  %1887 = vmatprep.mubr.msk.bf16.mxu1 %vm2197_vm1, %v2196_v7  ;;  %v351_v15 = vsel %vm166_vm2, %v2040_v46, %v2041_v45 }
 0x27b   :  { %v2044_v14 = vpop.permute.xlu0 %2043  ;;  %1897 = vmatprep.subr.bf16.mxu1 %v2196_v7  ;;  %v387_v50 = vpack.c.bf16 %v351_v15, %v351_v15 }
 0x27c   :  { %v2046_v48 = vunpack.i.h.bf16 %v2044_v14  ;;  %v2045_v12 = vunpack.i.l.bf16 %v2044_v14 }
 0x27e   :  { %v566_v49 = vsel %vm166_vm2, %v2045_v12, %v2046_v48 }
 0x27f   :  { %v2049_v51 = vpop.permute.xlu1 %2048  ;;  %v568_v52 = vpack.c.bf16 %v566_v49, %v566_v49 }
 0x280   :  { %v2051_v16 = vunpack.i.h.bf16 %v2049_v51  ;;  %v2050_v53 = vunpack.i.l.bf16 %v2049_v51 }
 0x281   :  { %1888 = vmatmul.mubr.msk.bf16.vlgmr.msra.gmra.mrb[4].mxu1 %vm205_vm3, %v387_v50  ;;  %v573_v17 = vsel %vm205_vm3, %v568_v52, 0 }
 0x282   :  { %1898 = vmatpush3.bf16.xpose.msra.mxu1 %v573_v17  ;;  %1899 = vmatprep.mubr.msk.bf16.mxu1 %vm2197_vm1, %v2196_v7  ;;  %v531_v55 = vsel %vm166_vm2, %v2050_v53, %v2051_v16 }
 0x283   :  { %v2054_v54 = vpop.permute.xlu0 %2053  ;;  %1909 = vmatprep.subr.bf16.mxu1 %v2196_v7  ;;  %v567_v58 = vpack.c.bf16 %v531_v55, %v531_v55  ;;  %v41_v55 = vld [vmem:[%s2815_s1] sm:$0x3] }
 0x284   :  { %v2056_v9 = vunpack.i.h.bf16 %v2054_v54  ;;  %v2055_v56 = vunpack.i.l.bf16 %v2054_v54  ;;  %v130_v54 = vlaneseq  ;;  %vm135_vm5 = vcmp.gt.f32.partialorder %v41_v55, 0.5 }
 0x286   :  { %v746_v57 = vsel %vm166_vm2, %v2055_v56, %v2056_v9  ;;  %v131_v9 = vshrl.u32 %v130_v54, 7 }
 0x287   :  { %v2059_v59 = vpop.permute.xlu1 %2058  ;;  %v748_v60 = vpack.c.bf16 %v746_v57, %v746_v57  ;;  %v2222_v57 = vmov 0  }
 0x288   :  { %v2061_v18 = vunpack.i.h.bf16 %v2059_v59  ;;  %v2060_v19 = vunpack.i.l.bf16 %v2059_v59  ;;  %v139_v56 = vsub.s32 0, %v131_v9  ;;  %v133_v59 = vand.u32 127, %v130_v54 }
 0x289   :  { %1900 = vmatmul.mubr.msk.bf16.vlgmr.msra.gmra.mrb[8].mxu1 %vm205_vm3, %v567_v58  ;;  %v753_v61 = vsel %vm205_vm3, %v748_v60, 0  ;;  %v136_v58 = vsel %vm135_vm5, 1, %v2222_v57 }
 0x28a   :  { %1910 = vmatpush3.bf16.xpose.msra.mxu1 %v753_v61  ;;  %1911 = vmatprep.mubr.msk.bf16.mxu1 %vm2197_vm1, %v2196_v7  ;;  %v711_v0 = vsel %vm166_vm2, %v2060_v19, %v2061_v18  ;;  %v140_v60 = vrot.slane %v136_v58, %v139_v56  ;;  %vm134_vm6 = vcmp.ge.s32.totalorder %v131_v9, %v133_v59  ;;  %v2223_v19 = vmov -1e+09  }
 0x28b   :  { %v885_v62 = vpop.permute.xlu1 %884  ;;  %v2064_v63 = vpop.permute.xlu0 %2063  ;;  %1921 = vmatprep.subr.bf16.mxu1 %v2196_v7  ;;  %v747_v3 = vpack.c.bf16 %v711_v0, %v711_v0 }
 0x28c   :  { %v2066_v1 = vunpack.i.h.bf16 %v2064_v63  ;;  %v2065_v20 = vunpack.i.l.bf16 %v2064_v63  ;;  %v887_v8 = vsub.f32 %v881_v21, %v885_v62  ;;  %vm141_vm7 = vcmp.eq.s32.totalorder %v140_v60, 1 }
 0x28d   :  { %vm142_vm8 = vmand %vm134_vm6, %vm141_vm7  ;;  %v980_v60 = vpack.c.bf16 %v2377_v34, %v2377_v34 }
 0x28e   :  { %v918_v2 = vsel %vm166_vm2, %v2065_v20, %v2066_v1  ;;  %v143_v61 = vsel %vm142_vm8, 0.0, %v2223_v19 }
 0x28f   :  { %v2069_v5 = vpop.permute.xlu1 %2068  ;;  %v892_v22 = vpop.permute.xlu0 %891  ;;  %v920_v23 = vpack.c.bf16 %v918_v2, %v918_v2 }
 0x290   :  { %v2071_v24 = vunpack.i.h.bf16 %v2069_v5  ;;  %v2070_v25 = vunpack.i.l.bf16 %v2069_v5  ;;  %v894_v26 = vadd.f32 %v892_v22, %v2547_v4 }
 0x291   :  { %1912 = vmatmul.mubr.msk.bf16.vlgmr.msra.gmra.mrb[12].mxu1 %vm205_vm3, %v747_v3  ;;  %v925_v32 = vsel %vm205_vm3, %v920_v23, 0 }
 0x292   :  { %v895_v33 = vsel %vm166_vm2, %v887_v8, %v894_v26  ;;  %1922 = vmatpush3.bf16.xpose.msra.mxu1 %v925_v32  ;;  %1923 = vmatprep.mubr.msk.bf16.mxu1 %vm2197_vm1, %v2196_v7  ;;  %v1076_v10 = vsel %vm166_vm2, %v2070_v25, %v2071_v24 }
 0x293   :  { %1933 = vmatprep.subr.bf16.mxu1 %v2196_v7  ;;  %v2074_v27 = vpop.permute.xlu0 %2073  ;;  %v1078_v28 = vpack.c.bf16 %v1076_v10, %v1076_v10  ;;  %v919_v29 = vpack.c.bf16 %v895_v33, %v895_v33 }
 0x294   :  { %v2076_v35 = vunpack.i.h.bf16 %v2074_v27  ;;  %v2075_v4 = vunpack.i.l.bf16 %v2074_v27 }
 0x295   :  { %v1083_v38 = vsel %vm205_vm3, %v1078_v28, 0 }
 0x296   :  { %v1053_v40 = vsel %vm166_vm2, %v2075_v4, %v2076_v35 }
 0x297   :  { %v2079_v31 = vpop.permute.xlu1 %2078  ;;  %v1077_v13 = vpack.c.bf16 %v1053_v40, %v1053_v40 }
 0x298   :  { %v2081_v36 = vunpack.i.h.bf16 %v2079_v31  ;;  %v2080_v37 = vunpack.i.l.bf16 %v2079_v31 }
 0x299   :  { %1924 = vmatmul.mubr.msk.bf16.vlgmr.msra.gmra.mrb[16].mxu1 %vm205_vm3, %v919_v29 }
 0x29a   :  { %1934 = vmatpush3.bf16.xpose.msra.mxu1 %v1083_v38  ;;  %1935 = vmatprep.mubr.msk.bf16.mxu1 %vm2197_vm1, %v2196_v7  ;;  %v1232_v39 = vsel %vm166_vm2, %v2080_v37, %v2081_v36 }
 0x29b   :  { %1945 = vmatprep.subr.bf16.mxu1 %v2196_v7  ;;  %v2084_v41 = vpop.permute.xlu0 %2083  ;;  %v1234_v42 = vpack.c.bf16 %v1232_v39, %v1232_v39 }
 0x29c   :  { %v2086_v30 = vunpack.i.h.bf16 %v2084_v41  ;;  %v2085_v44 = vunpack.i.l.bf16 %v2084_v41 }
 0x29d   :  { %v1239_v46 = vsel %vm205_vm3, %v1234_v42, 0  ;;  %v876_v42 = vsub.s32 1, %v131_v9 }
 0x29e   :  { %v1209_v14 = vsel %vm166_vm2, %v2085_v44, %v2086_v30 }
 0x29f   :  { %v2089_v43 = vpop.permute.xlu1 %2088  ;;  %v1233_v48 = vpack.c.bf16 %v1209_v14, %v1209_v14  ;;  %v877_v30 = vrot.slane %v136_v58, %v876_v42 }
 0x2a0   :  { %v2091_v11 = vunpack.i.h.bf16 %v2089_v43  ;;  %v2090_v45 = vunpack.i.l.bf16 %v2089_v43 }
 0x2a1   :  { %1936 = vmatmul.mubr.msk.bf16.vlgmr.msra.gmra.mrb[20].mxu1 %vm205_vm3, %v1077_v13  ;;  %vm878_vm9 = vcmp.eq.s32.totalorder %v877_v30, 1 }
 0x2a2   :  { %1946 = vmatpush3.bf16.xpose.msra.mxu1 %v1239_v46  ;;  %1947 = vmatprep.mubr.msk.bf16.mxu1 %vm2197_vm1, %v2196_v7  ;;  %v1388_v47 = vsel %vm166_vm2, %v2090_v45, %v2091_v11  ;;  %vm879_vm10 = vmand %vm134_vm6, %vm878_vm9 }
 0x2a3   :  { %1957 = vmatprep.subr.bf16.mxu1 %v2196_v7  ;;  %v1390_v15 = vpack.c.bf16 %v1388_v47, %v1388_v47 }
 0x2a5   :  { %v1395_v51 = vsel %vm205_vm3, %v1390_v15, 0 }
 0x2a7   :  { %v2094_v12 = vpop.permute.xlu0 %2093 }
 0x2a8   :  { %v2096_v49 = vunpack.i.h.bf16 %v2094_v12  ;;  %v2095_v50 = vunpack.i.l.bf16 %v2094_v12 }
 0x2a9   :  { %1948 = vmatmul.mubr.msk.bf16.vlgmr.msra.gmra.mrb[24].mxu1 %vm205_vm3, %v1233_v48  ;;  %v880_v48 = vsel %vm879_vm10, 0.0, %v2223_v19 }
 0x2aa   :  { %1958 = vmatpush3.bf16.xpose.msra.mxu1 %v1395_v51  ;;  %1959 = vmatprep.mubr.msk.bf16.mxu1 %vm2197_vm1, %v2196_v7  ;;  %v1365_v16 = vsel %vm166_vm2, %v2095_v50, %v2096_v49 }
 0x2ab   :  { %v268_v52 = vpop.permute.xlu0 %267  ;;  %1969 = vmatprep.subr.bf16.mxu1 %v2196_v7  ;;  %v1389_v17 = vpack.c.bf16 %v1365_v16, %v1365_v16 }
 0x2ac   :  { %v274_v53 = vsel %vm272_vm4, %v268_v52, 0 }
 0x2ad   :  { %1880 = vmatpush3.bf16.msra.mxu0 %v274_v53 }
 0x2ae   :  { %1891 = vmatprep.subr.bf16.mxu0 %v2196_v7 }
 0x2b1   :  { %1960 = vmatmul.mubr.msk.bf16.vlgmr.msra.gmra.mrb[28].mxu1 %vm205_vm3, %v1389_v17 }
 0x2b2   :  { %1973 = vmatprep.mubr.msk.bf16.mxu1 %vm2197_vm1, %v2196_v7 }
 0x34c   :  { %v246_v18 = vpop.f32.mrb[0].mxu1 }
 0x34d   :  { %v252_v62 = vmul.f32 0.35355338, %v246_v18  ;;  %v1877_v63 = vpop.f32.mrb[1].mxu1  ;;  %v449_v18 = vpop.permute.xlu1 %448 }
 0x34e   :  { %v249_v0 = vpop.f32.mrb[2].mxu1 }
 0x34f   :  { %v1878_v1 = vpop.f32.mrb[3].mxu1  ;;  %v2630_v20 = vadd.f32 %v252_v62, %v143_v61 }
 0x351   :  { %v254_v21 = vsel %vm205_vm3, %v2630_v20, -inf }
 0x352   :  { %255 = vmax.xlane.f32.xlu1 %v254_v21 }
 0x354   :  { %v429_v2 = vpop.f32.mrb[4].mxu1 }
 0x355   :  { %v435_v3 = vmul.f32 0.35355338, %v429_v2  ;;  %v1889_v5 = vpop.f32.mrb[5].mxu1 }
 0x356   :  { %v432_v22 = vpop.f32.mrb[6].mxu1  ;;  %v454_v5 = vsel %vm272_vm4, %v449_v18, 0 }
 0x357   :  { %v1890_v23 = vpop.f32.mrb[7].mxu1  ;;  %v2634_v8 = vadd.f32 %v435_v3, %v143_v61 }
 0x359   :  { %v437_v24 = vsel %vm205_vm3, %v2634_v8, -inf }
 0x35a   :  { %438 = vmax.xlane.f32.xlu0 %v437_v24 }
 0x35c   :  { %v609_v25 = vpop.f32.mrb[8].mxu1 }
 0x35d   :  { %v615_v26 = vmul.f32 0.35355338, %v609_v25  ;;  %v1901_v32 = vpop.f32.mrb[9].mxu1 }
 0x35e   :  { %v612_v33 = vpop.f32.mrb[10].mxu1 }
 0x35f   :  { %v1902_v10 = vpop.f32.mrb[11].mxu1  ;;  %v2638_v27 = vadd.f32 %v615_v26, %v143_v61 }
 0x361   :  { %v617_v28 = vsel %vm205_vm3, %v2638_v27, -inf }
 0x362   :  { %618 = vmax.xlane.f32.xlu0 %v617_v28 }
 0x363   :  { %628 = vrot.lane.b32.xlu1 %v2556_v6, %s2208_s13 }
 0x364   :  { %v789_v29 = vpop.f32.mrb[12].mxu1 }
 0x365   :  { %v1913_v31 = vpop.f32.mrb[13].mxu1  ;;  %v795_v45 = vmul.f32 0.35355338, %v789_v29 }
 0x366   :  { %v792_v35 = vpop.f32.mrb[14].mxu1 }
 0x367   :  { %v1914_v4 = vpop.f32.mrb[15].mxu1  ;;  %v2647_v15 = vadd.f32 %v795_v45, %v143_v61 }
 0x36c   :  { %v961_v36 = vpop.f32.mrb[16].mxu1 }
 0x36d   :  { %v1925_v37 = vpop.f32.mrb[17].mxu1  ;;  %v967_v14 = vmul.f32 0.35355338, %v961_v36 }
 0x36e   :  { %v964_v38 = vpop.f32.mrb[18].mxu1 }
 0x36f   :  { %v1926_v39 = vpop.f32.mrb[19].mxu1  ;;  %v2651_v52 = vadd.f32 %v967_v14, %v880_v48 }
 0x371   :  { %v969_v17 = vsel %vm205_vm3, %v2651_v52, -inf }
 0x374   :  { %v1119_v40 = vpop.f32.mrb[20].mxu1 }
 0x375   :  { %v1937_v41 = vpop.f32.mrb[21].mxu1  ;;  %v1125_v55 = vmul.f32 0.35355338, %v1119_v40 }
 0x376   :  { %v1122_v13 = vpop.f32.mrb[22].mxu1 }
 0x377   :  { %v1938_v43 = vpop.f32.mrb[23].mxu1  ;;  %v2663_v58 = vadd.f32 %v1125_v55, %v880_v48 }
 0x378   :  { %808 = vrot.lane.b32.xlu0 %v2556_v6, %s2201_s25  ;;  %v797_v6 = vsel %vm205_vm3, %v2647_v15, -inf }
 0x379   :  { %v1127_v59 = vsel %vm205_vm3, %v2663_v58, -inf }
 0x37c   :  { %v1275_v44 = vpop.f32.mrb[24].mxu1 }
 0x37d   :  { %v1949_v11 = vpop.f32.mrb[25].mxu1  ;;  %v1281_v50 = vmul.f32 0.35355338, %v1275_v44 }
 0x37e   :  { %v1278_v46 = vpop.f32.mrb[26].mxu1 }
 0x37f   :  { %v1950_v47 = vpop.f32.mrb[27].mxu1  ;;  %v2655_v54 = vadd.f32 %v1281_v50, %v880_v48 }
 0x381   :  { %v1283_v9 = vsel %vm205_vm3, %v2655_v54, -inf }
 0x384   :  { %v1431_v12 = vpop.f32.mrb[28].mxu1 }
 0x385   :  { %v1961_v49 = vpop.f32.mrb[29].mxu1  ;;  %v1437_v53 = vmul.f32 0.35355338, %v1431_v12 }
 0x386   :  { %v1434_v51 = vpop.f32.mrb[30].mxu1 }
 0x387   :  { %798 = vmax.xlane.f32.xlu1 %v797_v6  ;;  %v1962_v16 = vpop.f32.mrb[31].mxu1  ;;  %v2659_v56 = vadd.f32 %v1437_v53, %v880_v48 }
 0x389   :  { %v1439_v57 = vsel %vm205_vm3, %v2659_v56, -inf }
 0x38b   :  { %970 = vmax.xlane.f32.xlu1 %v969_v17 }
 0x38f   :  { %1284 = vmax.xlane.f32.xlu1 %v1283_v9 }
 0x393   :  { %1440 = vmax.xlane.f32.xlu1 %v1439_v57 }
 0x397   :  { %1128 = vmax.xlane.f32.xlu0 %v1127_v59 }
 0x3a4   :  { %982 = vrot.lane.b32.xlu1 %v980_v60, %s2221_s3 }
 0x3ad   :  { %1138 = vrot.lane.b32.xlu0 %v980_v60, %s2204_s27 }
 0x3b1   :  { %1294 = vrot.lane.b32.xlu0 %v980_v60, %s2208_s13 }
 0x3b5   :  { %1450 = vrot.lane.b32.xlu0 %v980_v60, %s2201_s25 }
 0x3df   :  { %v256_v19 = vpop.xlane.xlu1 %255 }
 0x3e0   :  { %v257_v61 = vsub.f32 %v2630_v20, %v256_v19 }
 0x3e2   :  { %v258_v62 = vmul.f32 1.442695, %v257_v61 }
 0x3e3   :  { %v629_v23 = vpop.permute.xlu1 %628 }
 0x3e4   :  { %2126 = vpow2.f32 %v258_v62  ;;  %v634_v25 = vsel %vm272_vm4, %v629_v23, 0 }
 0x3e7   :  { %v439_v63 = vpop.xlane.xlu0 %438 }
 0x3e8   :  { %v440_v0 = vsub.f32 %v2634_v8, %v439_v63 }
 0x3ea   :  { %v441_v1 = vmul.f32 1.442695, %v440_v0 }
 0x3ec   :  { %2128 = vpow2.f32 %v441_v1 }
 0x3ee   :  { %v2675_v34 = vpop.eup %2126 }
 0x3ef   :  { %v619_v21 = vpop.xlane.xlu0 %618  ;;  %v264_v2 = vpack.c.bf16 %v2675_v34, %v2675_v34 }
 0x3f0   :  { %v620_v3 = vsub.f32 %v2638_v27, %v619_v21 }
 0x3f1   :  { %1882 = vmatmul.mubr.msk.bf16.vlgmr.msra.gmra.mrb[4].mxu0 %vm205_vm3, %v264_v2 }
 0x3f2   :  { %v621_v20 = vmul.f32 1.442695, %v620_v3  ;;  %1892 = vmatpush3.bf16.msra.mxu0 %v454_v5  ;;  %1893 = vmatprep.mubr.msk.bf16.mxu0 %vm2197_vm1, %v2196_v7 }
 0x3f3   :  { %1903 = vmatprep.subr.bf16.mxu0 %v2196_v7  ;;  %v809_v32 = vpop.permute.xlu0 %808 }
 0x3f4   :  { %2130 = vpow2.f32 %v621_v20  ;;  %v814_v27 = vsel %vm272_vm4, %v809_v32, 0 }
 0x3f6   :  { %v2129_v22 = vpop.eup %2128 }
 0x3f7   :  { %v443_v8 = vsel %vm205_vm3, %v2129_v22, 0.0  ;;  %v447_v24 = vpack.c.bf16 %v2129_v22, %v2129_v22 }
 0x3f8   :  { %444 = vadd.xlane.f32.xlu1 %v443_v8 }
 0x3f9   :  { %1894 = vmatmul.mubr.msk.bf16.vlgmr.msra.gmra.mrb[8].mxu0 %vm205_vm3, %v447_v24 }
 0x3fa   :  { %1904 = vmatpush3.bf16.msra.mxu0 %v634_v25  ;;  %1905 = vmatprep.mubr.msk.bf16.mxu0 %vm2197_vm1, %v2196_v7 }
 0x3fb   :  { %1915 = vmatprep.subr.bf16.mxu0 %v2196_v7 }
 0x3fe   :  { %v2131_v26 = vpop.eup %2130 }
 0x3ff   :  { %v623_v33 = vsel %vm205_vm3, %v2131_v26, 0.0  ;;  %v627_v10 = vpack.c.bf16 %v2131_v26, %v2131_v26 }
 0x400   :  { %624 = vadd.xlane.f32.xlu0 %v623_v33 }
 0x401   :  { %1906 = vmatmul.mubr.msk.bf16.vlgmr.msra.gmra.mrb[12].mxu0 %vm205_vm3, %v627_v10 }
 0x402   :  { %1916 = vmatpush3.bf16.msra.mxu0 %v814_v27  ;;  %1917 = vmatprep.mubr.msk.bf16.mxu0 %vm2197_vm1, %v2196_v7 }
 0x403   :  { %1927 = vmatprep.subr.bf16.mxu0 %v2196_v7 }
 0x414   :  { %v799_v28 = vpop.xlane.xlu1 %798 }
 0x415   :  { %v800_v29 = vsub.f32 %v2647_v15, %v799_v28 }
 0x417   :  { %v801_v31 = vmul.f32 1.442695, %v800_v29 }
 0x418   :  { %v971_v35 = vpop.xlane.xlu1 %970 }
 0x419   :  { %2132 = vpow2.f32 %v801_v31  ;;  %v972_v4 = vsub.f32 %v2651_v52, %v971_v35 }
 0x41b   :  { %v973_v36 = vmul.f32 1.442695, %v972_v4 }
 0x41c   :  { %v1285_v37 = vpop.xlane.xlu1 %1284 }
 0x41d   :  { %v1286_v38 = vsub.f32 %v2655_v54, %v1285_v37  ;;  %2134 = vpow2.f32 %v973_v36 }
 0x41f   :  { %v1287_v39 = vmul.f32 1.442695, %v1286_v38 }
 0x420   :  { %v1441_v40 = vpop.xlane.xlu1 %1440 }
 0x421   :  { %2136 = vpow2.f32 %v1287_v39  ;;  %v1442_v41 = vsub.f32 %v2659_v56, %v1441_v40  ;;  %v260_v56 = vsel %vm205_vm3, %v2675_v34, 0.0  ;;  %v2114_v39 = vld [vmem:[%s2820_s6] sm:$0xff]  }
 0x422   :  { %1970 = vmatpush3.bf16.msra.mxu1 %v2114_v39 }
 0x423   :  { %v2133_v42 = vpop.eup %2132  ;;  %v1443_v13 = vmul.f32 1.442695, %v1442_v41  ;;  %1971 = vmatprep.subr.bf16.mxu1 %v2196_v7 }
 0x424   :  { %v1129_v43 = vpop.xlane.xlu0 %1128  ;;  %v983_v30 = vpop.permute.xlu1 %982  ;;  %v807_v44 = vpack.c.bf16 %v2133_v42, %v2133_v42  ;;  %v803_v55 = vsel %vm205_vm3, %v2133_v42, 0.0 }
 0x425   :  { %2138 = vpow2.f32 %v1443_v13  ;;  %v1130_v11 = vsub.f32 %v2663_v58, %v1129_v43  ;;  %v988_v45 = vsel %vm272_vm4, %v983_v30, 0 }
 0x426   :  { %1918 = vmatmul.mubr.msk.bf16.vlgmr.msra.gmra.mrb[16].mxu0 %vm205_vm3, %v807_v44 }
 0x427   :  { %v1131_v46 = vmul.f32 1.442695, %v1130_v11  ;;  %1928 = vmatpush3.bf16.msra.mxu0 %v988_v45  ;;  %1929 = vmatprep.mubr.msk.bf16.mxu0 %vm2197_vm1, %v2196_v7  ;;  %v2135_v47 = vpop.eup %2134 }
 0x428   :  { %1939 = vmatprep.subr.bf16.mxu0 %v2196_v7  ;;  %v1139_v15 = vpop.permute.xlu0 %1138  ;;  %v979_v12 = vpack.c.bf16 %v2135_v47, %v2135_v47  ;;  %v975_v53 = vsel %vm205_vm3, %v2135_v47, 0.0 }
 0x429   :  { %2140 = vpow2.f32 %v1131_v46  ;;  %v1144_v49 = vsel %vm272_vm4, %v1139_v15, 0  ;;  %v2115_v15 = vld [vmem:[%s2820_s6 + $0x8] sm:$0xff]  }
 0x42a   :  { %1972 = vmatpush3.bf16.msra.mxu1 %v2115_v15  ;;  %v2121_v15 = vld [vmem:[%s2823_s9 + $0x18] sm:$0xff]  }
 0x42b   :  { %v2137_v14 = vpop.eup %2136  ;;  %1985 = vmatprep.subr.bf16.mxu1 %v2196_v7 }
 0x42c   :  { %v1289_v48 = vsel %vm205_vm3, %v2137_v14, 0.0  ;;  %v1295_v52 = vpop.permute.xlu0 %1294  ;;  %v1293_v57 = vpack.c.bf16 %v2137_v14, %v2137_v14 }
 0x42d   :  { %1290 = vadd.xlane.f32.xlu1 %v1289_v48  ;;  %v1300_v54 = vsel %vm272_vm4, %v1295_v52, 0 }
 0x42e   :  { %1930 = vmatmul.mubr.msk.bf16.vlgmr.msra.gmra.mrb[20].mxu0 %vm205_vm3, %v979_v12 }
 0x42f   :  { %v2139_v50 = vpop.eup %2138  ;;  %1940 = vmatpush3.bf16.msra.mxu0 %v1144_v49  ;;  %1941 = vmatprep.mubr.msk.bf16.mxu0 %vm2197_vm1, %v2196_v7 }
 0x430   :  { %v1445_v51 = vsel %vm205_vm3, %v2139_v50, 0.0  ;;  %1951 = vmatprep.subr.bf16.mxu0 %v2196_v7  ;;  %v1451_v9 = vpop.permute.xlu0 %1450  ;;  %v1449_v59 = vpack.c.bf16 %v2139_v50, %v2139_v50 }
 0x431   :  { %1446 = vadd.xlane.f32.xlu1 %v1445_v51  ;;  %v1456_v58 = vsel %vm272_vm4, %v1451_v9, 0 }
 0x433   :  { %v2141_v6 = vpop.eup %2140 }
 0x434   :  { %v1133_v16 = vsel %vm205_vm3, %v2141_v6, 0.0  ;;  %v1137_v17 = vpack.c.bf16 %v2141_v6, %v2141_v6 }
 0x435   :  { %1134 = vadd.xlane.f32.xlu0 %v1133_v16  ;;  %976 = vadd.xlane.f32.xlu1 %v975_v53 }
 0x436   :  { %1942 = vmatmul.mubr.msk.bf16.vlgmr.msra.gmra.mrb[24].mxu0 %vm205_vm3, %v1137_v17 }
 0x437   :  { %1952 = vmatpush3.bf16.msra.mxu0 %v1300_v54  ;;  %1953 = vmatprep.mubr.msk.bf16.mxu0 %vm2197_vm1, %v2196_v7 }
 0x438   :  { %1963 = vmatprep.subr.bf16.mxu0 %v2196_v7 }
 0x439   :  { %804 = vadd.xlane.f32.xlu0 %v803_v55 }
 0x43d   :  { %261 = vadd.xlane.f32.xlu0 %v260_v56 }
 0x43e   :  { %1954 = vmatmul.mubr.msk.bf16.vlgmr.msra.gmra.mrb[28].mxu0 %vm205_vm3, %v1293_v57 }
 0x43f   :  { %1964 = vmatpush3.bf16.msra.mxu0 %v1456_v58  ;;  %1965 = vmatprep.mubr.msk.bf16.mxu0 %vm2197_vm1, %v2196_v7 }
 0x440   :  { %1977 = vmatprep.subr.bf16.mxu0 %v2196_v7 }
 0x446   :  { %1966 = vmatmul.mubr.msk.bf16.vlgmr.msra.gmra.mrb[32].mxu0 %vm205_vm3, %v1449_v59 }
 0x447   :  { %1981 = vmatprep.mubr.msk.bf16.mxu0 %vm2197_vm1, %v2196_v7 }
 0x485   :  { %v445_v23 = vpop.xlane.xlu1 %444 }
 0x486   :  { %2142 = vrcp.f32 %v445_v23  ;;  %v2170_v23 = vld [vmem:[%s2814_s0] sm:$0xff] }
 0x48d   :  { %v625_v5 = vpop.xlane.xlu0 %624 }
 0x490   :  { %v2143_v28 = vpop.eup %2142 }
 0x4ba   :  { %v1291_v10 = vpop.xlane.xlu1 %1290 }
 0x4be   :  { %v1447_v37 = vpop.xlane.xlu1 %1446 }
 0x4c2   :  { %v1135_v24 = vpop.xlane.xlu0 %1134  ;;  %v977_v54 = vpop.xlane.xlu1 %976 }
 0x4c3   :  { %2144 = vrcp.f32 %v1135_v24 }
 0x4c4   :  { %v2732_v60 = vpop.f32.mrb[4].mxu0  ;;  %2146 = vrcp.f32 %v625_v5 }
 0x4c5   :  { %v1883_v18 = vpop.f32.mrb[5].mxu0  ;;  %2148 = vrcp.f32 %v1291_v10 }
 0x4c6   :  { %v313_v19 = vpop.f32.mrb[6].mxu0  ;;  %v805_v40 = vpop.xlane.xlu0 %804  ;;  %2150 = vrcp.f32 %v1447_v37 }
 0x4c7   :  { %v1884_v61 = vpop.f32.mrb[7].mxu0  ;;  %2152 = vrcp.f32 %v805_v40 }
 0x4ca   :  { %v262_v17 = vpop.xlane.xlu0 %261 }
 0x4cb   :  { %2154 = vrcp.f32 %v262_v17 }
 0x4cc   :  { %v490_v62 = vpop.f32.mrb[8].mxu0  ;;  %2156 = vrcp.f32 %v977_v54 }
 0x4cd   :  { %v1895_v63 = vpop.f32.mrb[9].mxu0  ;;  %v2145_v29 = vpop.eup %2144  ;;  %v496_v35 = vmul.f32 %v2143_v28, %v490_v62 }
 0x4ce   :  { %v493_v0 = vpop.f32.mrb[10].mxu0  ;;  %v2147_v13 = vpop.eup %2146 }
 0x4cf   :  { %v1896_v1 = vpop.f32.mrb[11].mxu0  ;;  %v2149_v43 = vpop.eup %2148 }
 0x4d0   :  { %v2151_v48 = vpop.eup %2150 }
 0x4d1   :  { %v2153_v12 = vpop.eup %2152 }
 0x4d4   :  { %v670_v34 = vpop.f32.mrb[12].mxu0 }
 0x4d5   :  { %v1907_v21 = vpop.f32.mrb[13].mxu0  ;;  %v676_v44 = vmul.f32 %v2147_v13, %v670_v34  ;;  %v2155_v56 = vpop.eup %2154 }
 0x4d6   :  { %v673_v2 = vpop.f32.mrb[14].mxu0  ;;  %v2157_v59 = vpop.eup %2156  ;;  %v316_v62 = vmul.f32 %v2155_v56, %v2732_v60 }
 0x4d7   :  { %v1908_v3 = vpop.f32.mrb[15].mxu0 }
 0x4f9   :  { %v850_v20 = vpop.f32.mrb[16].mxu0 }
 0x4fa   :  { %v1919_v22 = vpop.f32.mrb[17].mxu0  ;;  %v856_v50 = vmul.f32 %v2153_v12, %v850_v20 }
 0x4fb   :  { %v853_v8 = vpop.f32.mrb[18].mxu0 }
 0x4fc   :  { %v1920_v25 = vpop.f32.mrb[19].mxu0 }
 0x501   :  { %v1024_v26 = vpop.f32.mrb[20].mxu0 }
 0x502   :  { %v1931_v32 = vpop.f32.mrb[21].mxu0  ;;  %v1030_v61 = vmul.f32 %v2157_v59, %v1024_v26  ;;  %v2171_v26 = vld [vmem:[%s2814_s0 + $0x8] sm:$0xff] }
 0x503   :  { %v1027_v33 = vpop.f32.mrb[22].mxu0 }
 0x504   :  { %v1932_v27 = vpop.f32.mrb[23].mxu0 }
 0x509   :  { %v1180_v31 = vpop.f32.mrb[24].mxu0 }
 0x50a   :  { %v1186_v4 = vmul.f32 %v2145_v29, %v1180_v31  ;;  %v1943_v36 = vpop.f32.mrb[25].mxu0  ;;  %v2116_v31 = vld [vmem:[%s2822_s8] sm:$0xff]  }
 0x50b   :  { %v1183_v38 = vpop.f32.mrb[26].mxu0  ;;  %1978 = vmatpush3.bf16.msra.mxu0 %v2116_v31 }
 0x50c   :  { %v2097_v41 = vpack.i.bf16 %v1186_v4, %v496_v35  ;;  %v1944_v42 = vpop.f32.mrb[27].mxu0  ;;  %v2117_v35 = vld [vmem:[%s2822_s8 + $0x8] sm:$0xff]   ;;  %1979 = vmatprep.subr.bf16.mxu0 %v2196_v7 }
 0x50e   :  { %2098 = vrot.lane.b32.xlu0 %v2097_v41, %s2205_s28 }
 0x50f   :  { %1980 = vmatpush3.bf16.msra.mxu0 %v2117_v35 }
 0x511   :  { %v1336_v30 = vpop.f32.mrb[28].mxu0 }
 0x512   :  { %v1342_v11 = vmul.f32 %v2149_v43, %v1336_v30  ;;  %v1955_v45 = vpop.f32.mrb[29].mxu0  ;;  %v1808_v43 = vld [vmem:[%s2821_s7] ss:$0 sm:$0xff] }
 0x513   :  { %v1339_v46 = vpop.f32.mrb[30].mxu0 }
 0x514   :  { %v2102_v47 = vpack.i.bf16 %v1342_v11, %v676_v44  ;;  %v1956_v14 = vpop.f32.mrb[31].mxu0  ;;  %v2118_v46 = vld [vmem:[%s2823_s9] sm:$0xff]  }
 0x515   :  { %v2120_v14 = vld [vmem:[%s2823_s9 + $0x10] sm:$0xff]  }
 0x516   :  { %2103 = vrot.lane.b32.xlu1 %v2102_v47, %s2202_s26  ;;  %v2119_v47 = vld [vmem:[%s2823_s9 + $0x8] sm:$0xff]   ;;  %s2224_s9 = smov [#allocation2]  }
 0x517   :  { %s1774_s23 = sshll.u32 %s2224_s9, 4  ;;  %s1775_s23 = int_to_ptr.vmem [resolvable:$true] %s1774_s23 }
 0x518   :  { %s2172_s24 = scalar_lea.vmem %s1775_s23, 256  ;;  %p2177_p1 = scmp.lt.s32.totalorder %s1775_s23, %s1775_s23 }
 0x519   :  { %v1492_v49 = vpop.f32.mrb[32].mxu0  ;;  %p2173_p0 = scmp.ne.s32.totalorder %s1775_s23, %s2172_s24  ;;  %p2178_p2 = scmp.lt.s32.totalorder %s2172_s24, %s2172_s24 }
 0x51a   :  { %v1498_v51 = vmul.f32 %v2151_v48, %v1492_v49  ;;  %v1967_v6 = vpop.f32.mrb[33].mxu0 }
 0x51b   :  { %v1495_v52 = vpop.f32.mrb[34].mxu0  ;;  %p2179_p3 = por %p2178_p2, %p2177_p1 }
 0x51c   :  { %v2107_v16 = vpack.i.bf16 %v1498_v51, %v856_v50  ;;  %v1968_v53 = vpop.f32.mrb[35].mxu0 }
 0x51d   :  { %p2180_p4 = pnand %p2179_p3, %p2173_p0 }
 0x51e   :  { %2108 = vrot.lane.b32.xlu1 %v2107_v16, %s2206_s29 }
 0x580   :  { %v2099_v55 = vpop.permute.xlu0 %2098 }
 0x581   :  { %v2101_v57 = vunpack.i.h.bf16 %v2099_v55  ;;  %v2100_v58 = vunpack.i.l.bf16 %v2099_v55 }
 0x583   :  { %v869_v0 = vsel %vm205_vm3, %v316_v62, %v2100_v58  ;;  %v1511_v1 = vsel %vm205_vm3, %v1030_v61, %v2101_v57 }
 0x588   :  { %v2104_v9 = vpop.permute.xlu1 %2103 }
 0x589   :  { %v2106_v18 = vunpack.i.h.bf16 %v2104_v9  ;;  %v2105_v19 = vunpack.i.l.bf16 %v2104_v9 }
 0x58b   :  { %v1512_v2 = vsel %vm870_vm11, %v1511_v1, %v2106_v18  ;;  %v871_v3 = vsel %vm870_vm11, %v869_v0, %v2105_v19 }
 0x590   :  { %v2109_v63 = vpop.permute.xlu1 %2108 }
 0x591   :  { %v2111_v34 = vunpack.i.h.bf16 %v2109_v63  ;;  %v2110_v21 = vunpack.i.l.bf16 %v2109_v63 }
 0x593   :  { %v873_v5 = vsel %vm872_vm12, %v871_v3, %v2110_v21  ;;  %v1513_v20 = vsel %vm872_vm12, %v1512_v2, %v2111_v34 }
 0x594   :  { %v1518_v22 = vpack.c.bf16 %v1513_v20, %v873_v5 }
 0x596   :  { %1974 = vmatmul.mubr.msk.bf16.vlgmr.msra.gmra.mrb[32].mxu1 %vm45_vm0, %v1518_v22 }
 0x597   :  { %1993 = vmatprep.mubr.msk.bf16.mxu1 %vm2197_vm1, %v2196_v7  ;;  %1986 = vmatpush3.bf16.msra.mxu1 %v2118_v46 }
 0x598   :  { %1987 = vmatprep.subr.bf16.mxu1 %v2196_v7 }
 0x59b   :  { %1988 = vmatpush3.bf16.msra.mxu1 %v2119_v47 }
 0x59c   :  { %1989 = vmatprep.subr.bf16.mxu1 %v2196_v7 }
 0x59f   :  { %1990 = vmatpush3.bf16.msra.mxu1 %v2120_v14 }
 0x5a0   :  { %1991 = vmatprep.subr.bf16.mxu1 %v2196_v7 }
 0x5a3   :  { %1992 = vmatpush3.bf16.msra.mxu1 %v2121_v15 }
 0x669   :  { %v1568_v60 = vpop.f32.mrb[32].mxu1 }
 0x66a   :  { %v2754_v8 = vadd.f32 %v2170_v23, %v1568_v60  ;;  %v1975_v24 = vpop.f32.mrb[33].mxu1 }
 0x66b   :  { %v1571_v25 = vpop.f32.mrb[34].mxu1 }
 0x66c   :  { %v2759_v32 = vadd.f32 %v2171_v26, %v1571_v25  ;;  %v1976_v33 = vpop.f32.mrb[35].mxu1  ;;  %v1578_v10 = vmul.f32 %v2754_v8, %v2754_v8 }
 0x66e   :  { %v1580_v27 = vsel %vm45_vm0, %v1578_v10, 0.0  ;;  %v1579_v28 = vmul.f32 %v2759_v32, %v2759_v32 }
 0x66f   :  { %1581 = vadd.xlane.f32.xlu0 %v1580_v27 }
 0x670   :  { %v1583_v29 = vsel %vm45_vm0, %v1579_v28, 0.0 }
 0x671   :  { %1584 = vadd.xlane.f32.xlu1 %v1583_v29 }
 0x6fc   :  { %v1582_v4 = vpop.xlane.xlu0 %1581 }
 0x6fd   :  { %v1586_v36 = vmul.f32 0.03125, %v1582_v4 }
 0x6fe   :  { %v1585_v37 = vpop.xlane.xlu1 %1584 }
 0x6ff   :  { %v1588_v38 = vadd.f32 1e-06, %v1586_v36  ;;  %v1587_v39 = vmul.f32 0.03125, %v1585_v37 }
 0x701   :  { %2158 = vrsqrt.f32 %v1588_v38  ;;  %v1589_v40 = vadd.f32 1e-06, %v1587_v39 }
 0x703   :  { %2160 = vrsqrt.f32 %v1589_v40 }
 0x70b   :  { %v2159_v41 = vpop.eup %2158 }
 0x70c   :  { %v1592_v42 = vmul.f32 %v2159_v41, %v2754_v8 }
 0x70d   :  { %v2161_v13 = vpop.eup %2160 }
 0x70e   :  { %v1593_v30 = vmul.f32 %v2161_v13, %v2759_v32  ;;  %v1600_v44 = vmul.f32 %v1808_v43, %v1592_v42 }
 0x710   :  { %v1601_v11 = vmul.f32 %v1808_v43, %v1593_v30 }
 0x712   :  { %v1606_v45 = vpack.c.bf16 %v1601_v11, %v1600_v44 }
 0x714   :  { %1982 = vmatmul.mubr.msk.bf16.vlgmr.msra.gmra.mrb[36].mxu0 %vm45_vm0, %v1606_v45 }
 0x7e7   :  { %v1656_v48 = vpop.f32.mrb[36].mxu0 }
 0x7e8   :  { %1679 = vrot.lane.b32.xlu0 %v1656_v48, %s2221_s3  ;;  %v1983_v12 = vpop.f32.mrb[37].mxu0  ;;  %v1812_v51 = vmul.f32 -1.442695, %v1656_v48 }
 0x7e9   :  { %v1659_v49 = vpop.f32.mrb[38].mxu0 }
 0x7ea   :  { %1681 = vrot.lane.b32.xlu1 %v1659_v49, %s2221_s3  ;;  %v1984_v50 = vpop.f32.mrb[39].mxu0  ;;  %v1813_v6 = vmul.f32 -1.442695, %v1659_v49  ;;  %2162 = vpow2.f32 %v1812_v51 }
 0x7ec   :  { %2164 = vpow2.f32 %v1813_v6 }
 0x7f4   :  { %v2163_v52 = vpop.eup %2162 }
 0x7f5   :  { %v1669_v7 = vadd.f32 1.0, %v2163_v52 }
 0x7f6   :  { %v2165_v16 = vpop.eup %2164 }
 0x7f7   :  { %v1670_v53 = vadd.f32 1.0, %v2165_v16  ;;  %2166 = vrcp.f32 %v1669_v7 }
 0x7f9   :  { %2168 = vrcp.f32 %v1670_v53 }
 0x801   :  { %v2167_v17 = vpop.eup %2166 }
 0x802   :  { %v1675_v9 = vmul.f32 %v2167_v17, %v1656_v48 }
 0x803   :  { %v2169_v54 = vpop.eup %2168 }
 0x804   :  { %v1676_v56 = vmul.f32 %v2169_v54, %v1659_v49 }
 0x85a   :  { %v1680_v55 = vpop.permute.xlu0 %1679 }
 0x85b   :  { %v1685_v58 = vmul.f32 %v1680_v55, %v1675_v9 }
 0x85c   :  { %v1682_v57 = vpop.permute.xlu1 %1681 }
 0x85d   :  { %v1686_v59 = vmul.f32 %v1682_v57, %v1676_v56 }
 0x85f   :  { %v1695_v18 = vpack.c.bf16 %v1686_v59, %v1685_v58 }
 0x861   :  { %1994 = vmatmul.mubr.msk.bf16.vlgmr.msra.gmra.mrb[36].mxu1 %vm1720_vm13, %v1695_v18 }
 0x934   :  { %v1758_v19 = vpop.f32.mrb[36].mxu1 }
 0x935   :  { %v1765_v61 = vadd.f32 %v1758_v19, %v2754_v8  ;;  %v1995_v62 = vpop.f32.mrb[37].mxu1 }
 0x936   :  { %v1761_v63 = vpop.f32.mrb[38].mxu1 }
 0x937   :  { %1767 = vst.msk [vmem:[#allocation2] sm:$0xff] %vm45_vm0, %v1765_v61  ;;  %v1766_v0 = vadd.f32 %v1761_v63, %v2759_v32  ;;  %v1996_v1 = vpop.f32.mrb[39].mxu1 }
 0x939   :  { %1768 = vst.msk [vmem:[#allocation2 + $0x8] sm:$0xff] %vm45_vm0, %v1766_v0 }
 0x93a   :  { %2183 = shalt.err (!%p2180_p4)
}
 0x93b   :  { %s2184_s30 = scalar_lea.hbm %s2824_s10, 256 }
 0x93c   :  { %p2185_p5 = scmp.ne.s32.totalorder %s2824_s10, %s2184_s30  ;;  %p2188_p6 = scmp.lt.u32.totalorder %s2184_s30, %s2824_s10 }
 0x93e   :  { %p2190_p7 = pnand %p2188_p6, %p2185_p5 }
 0x940   :  { %2193 = shalt.err (!%p2190_p7)
}
 0x941   :  { %s2225_s12 = smov 128  }
 0x942   :  { %1780 = dma.vmem_to_hbm [thread:$0]  %s1775_s23, 256, %s2824_s10, [#allocation3], %s2225_s12, %s2225_s12, %s2205_s28  }
 0x943   :  { %2194 = dma.done.wait [#allocation3], 256  }
 0x944   :  { %2195 = vsyncadd [#allocation3], 4294967040 }
 0x945   :  { %1784 = vsyncpa [#allocation3], 1 }

</bundles_post_ra>
